<compile_context>
chip_gen: v5e
topology: v5e:2x2
jax: 0.10.0
libtpu: 0.0.40
codegen_flags: <defaults>
</compile_context>

<pallas_src>
import functools

import jax
import jax.numpy as jnp
import numpy as np
from jax.experimental import pallas as pl
from jax.experimental.pallas import tpu as pltpu


def _fgd_loss_kernel(w_ref, b_ref, mask_ref, xs_ref, xt_ref, out_ref,
                     *, N, Ct, H, W, temp):
    """One image per grid step. All feature math is lane-dense (C, H*W)."""
    f32 = jnp.float32
    HW = H * W
    inv_temp = 1.0 / temp
    hi = jax.lax.Precision.HIGHEST   # only used for *thin* reduction matmuls

    # ---- align: 1x1 conv as a single native bf16 MXU matmul (f32 acc) -------
    s_feat = jnp.dot(w_ref[...], xs_ref[...],
                     preferred_element_type=f32) + b_ref[...]       # (Ct, HW)
    t_feat = xt_ref[...].astype(f32)      # cast exactly once (v5e friendly)

    # ---- |x| reductions on the MXU (thin matmuls against ones vectors) ------
    ones_hw = jnp.ones((HW, 1), f32)
    ones_ct = jnp.ones((1, Ct), f32)

    def stats(feat):
        a = jnp.abs(feat)                                       # short-lived
        cm = jnp.dot(a, ones_hw, preferred_element_type=f32, precision=hi)
        fm = jnp.dot(ones_ct, a, preferred_element_type=f32, precision=hi)
        return cm * (1.0 / HW), fm * (1.0 / Ct)                 # (Ct,1), (1,HW)

    cm_s, fm_s = stats(s_feat)
    cm_t, fm_t = stats(t_feat)

    # Squared diff early so s_feat / t_feat die before the softmax/texture math.
    d2 = jnp.square(s_feat - t_feat)                            # (Ct, HW)

    def channel_attention(cm):                                  # cm: (Ct, 1)
        z = cm * inv_temp
        e = jnp.exp(z - jnp.max(z, axis=0, keepdims=True))
        inv = 1.0 / jnp.sum(e, axis=0, keepdims=True)           # exact (1,1) div
        return e * (float(Ct) * inv)                            # (Ct, 1)

    # TODO(synk): run the texture path on a sublane-dense (H, W) / (8, HW/8)
    # layout (sublane rolls for dh, lane rolls for dw) to avoid the 1/8-density
    # (1, HW) elementwise passes; kept flat here to avoid in-kernel relayouts.
    def texture(fm):                                            # fm: (1, HW)
        # Centre tap initialises the window sums (no mask, no zero-init).
        s = fm
        ssq = fm * fm
        idx = 0
        for dh in (-1, 0, 1):
            for dw in (-1, 0, 1):
                if dh == 0 and dw == 0:
                    continue
                # out[k] = fm[k + dh*W + dw] (zero outside the image):
                # static lane roll on the XLU + precomputed validity mask.
                shift = (-(dh * W + dw)) % HW
                v = pltpu.roll(fm, shift=shift, axis=1) * mask_ref[idx:idx + 1, :]
                s = s + v
                ssq = ssq + v * v
                idx += 1
        # unbiased variance of the 9 (zero-padded) window values
        var = (ssq - s * s * (1.0 / 9.0)) * (1.0 / 8.0)
        z = var * inv_temp
        e = jnp.exp(z - jnp.max(z, axis=1, keepdims=True))
        inv = 1.0 / jnp.sum(e, axis=1, keepdims=True)           # exact (1,1) div
        return e * (float(HW) * inv)                            # (1, HW)

    c_att_s = channel_attention(cm_s)
    c_att_t = channel_attention(cm_t)
    tex_s = texture(fm_s)
    tex_t = texture(fm_t)

    mask_partial = jnp.sum(jnp.abs(c_att_s - c_att_t))
    tex_partial = jnp.sum(jnp.abs(tex_t - tex_s))

    # feat loss via rank-1 weight folding: (sqrt(tex_t)*sqrt(C_t))^2 = tex_t*C_t.
    # Channel contraction on the MXU, then a cheap (1, HW) pixel weighting.
    w_pix = jnp.dot(c_att_t.T, d2, preferred_element_type=f32, precision=hi)
    sq = jnp.sum(w_pix * tex_t)

    partial = (sq * (1.0 / (N * Ct * HW * N))                   # MSE(mean) / N
               + (0.01 / N) * tex_partial
               + 0.001 * mask_partial)

    out_ref[...] = jnp.zeros((1, 1), f32) + partial


def _vmem_budget_bytes(Cs_pad, Ct, HW):
    """Generation-aware VMEM budget; fail fast if the shape can't fit."""
    try:
        cap = int(pltpu.get_tpu_info().vmem_capacity_bytes)
    except Exception:                       # unknown part: assume v7x (64 MiB)
        cap = 64 << 20
    usable = int(cap * 0.8)                 # headroom for Mosaic internals
    feat_in = 2 * (2 * HW * (Cs_pad + Ct))  # double-buffered bf16 feature blocks
    temps = 4 * (Ct * HW * 4)               # s/t feat + one full |.|/d2 temp (f32)
    small = 2 * (Ct * Cs_pad * 2 + Ct * 4 + 8 * HW * 4) + 12 * HW * 4
    est = feat_in + temps + small + (4 << 20)
    if est > usable:
        # TODO(synk): channel-tiled two-pass variant (pass 1 accumulates cm/fm,
        # pass 2 re-streams channel tiles for the weighted d2 sum) so VMEM is
        # bounded by the channel-tile size instead of C for detector-scale maps.
        raise NotImplementedError(
            f"FGD FeatureLoss Pallas kernel: estimated VMEM footprint "
            f"{est / 2**20:.1f} MiB exceeds usable VMEM {usable / 2**20:.1f} MiB "
            f"on this TPU generation.")
    return max(est, 16 << 20)


def feature_loss(preds_S, preds_T, gt_bboxes, img_metas, w_align, b_align,
                 temp=0.5):
    """Pallas implementation of FeatureLoss.forward.

    gt_bboxes / img_metas are accepted for API fidelity but (as in the PyTorch
    forward above) are not used in the loss computation.
    """
    del gt_bboxes, img_metas
    N, Cs, H, W = preds_S.shape
    Nt, Ct, Ht, Wt = preds_T.shape
    assert (H, W) == (Ht, Wt) and N == Nt
    HW = H * W

    if w_align is None:                 # student_channels == teacher_channels
        assert Cs == Ct
        w_align = jnp.eye(Ct, dtype=jnp.float32)
        b_align = jnp.zeros((Ct, 1), jnp.float32)

    # Lane-dense layout (C, H*W); bf16 DMA halves HBM traffic and the matmul
    # runs as a native single-pass bf16 MXU op with f32 accumulation.
    xs = preds_S.astype(jnp.bfloat16).reshape(N, Cs, HW)
    xt = preds_T.astype(jnp.bfloat16).reshape(N, Ct, HW)
    w = w_align.astype(jnp.bfloat16).reshape(Ct, Cs)
    b = b_align.astype(jnp.float32).reshape(Ct, 1)

    # Pad the contracted student-channel axis to the bf16 sublane tile (16);
    # zero rows/cols contribute nothing.
    Cs_pad = ((Cs + 15) // 16) * 16
    if Cs_pad != Cs:
        xs = jnp.pad(xs, ((0, 0), (0, Cs_pad - Cs), (0, 0)))
        w = jnp.pad(w, ((0, 0), (0, Cs_pad - Cs)))

    # Source-validity masks for the 8 off-centre taps of the 3x3 zero-padded
    # window, in flattened row-major pixel order (trace-time constants).
    i_idx, j_idx = np.divmod(np.arange(HW), W)
    masks = []
    for dh in (-1, 0, 1):
        for dw in (-1, 0, 1):
            if dh == 0 and dw == 0:
                continue
            masks.append((i_idx + dh >= 0) & (i_idx + dh < H)
                         & (j_idx + dw >= 0) & (j_idx + dw < W))
    window_masks = jnp.asarray(np.stack(masks).astype(np.float32))   # (8, HW)

    kernel = functools.partial(_fgd_loss_kernel,
                               N=N, Ct=Ct, H=H, W=W, temp=temp)

    vmem_limit = _vmem_budget_bytes(Cs_pad, Ct, HW)

    grid_spec = pltpu.PrefetchScalarGridSpec(
        num_scalar_prefetch=0,
        grid=(N,),
        in_specs=[
            pl.BlockSpec((Ct, Cs_pad), lambda n: (0, 0)),        # align weight
            pl.BlockSpec((Ct, 1), lambda n: (0, 0)),             # align bias
            pl.BlockSpec((8, HW), lambda n: (0, 0)),             # 3x3 masks
            pl.BlockSpec((None, Cs_pad, HW), lambda n: (n, 0, 0)),
            pl.BlockSpec((None, Ct, HW), lambda n: (n, 0, 0)),
        ],
        out_specs=pl.BlockSpec((None, 1, 1), lambda n: (n, 0, 0)),
    )

    # TODO(synk): when N == 1 on v7x, add a second "parallel" grid axis (2-way
    # channel split producing partial cm/fm/d2 sums) so both TensorCores work.
    partials = pl.pallas_call(
        kernel,
        grid_spec=grid_spec,
        out_shape=jax.ShapeDtypeStruct((N, 1, 1), jnp.float32),
        compiler_params=pltpu.CompilerParams(
            dimension_semantics=("parallel",),
            vmem_limit_bytes=vmem_limit),
    )(w, b, window_masks, xs, xt)
    return jnp.sum(partials)


def _reference_loss(preds_S, preds_T, w_align, b_align, temp):
    """Pure-JAX reference mirroring the PyTorch forward (for validation)."""
    N, Cs, H, W = preds_S.shape
    Ct = preds_T.shape[1]
    aligned = jnp.einsum('oi,nihw->nohw', w_align, preds_S,
                         precision=jax.lax.Precision.HIGHEST) \
        + b_align.reshape(1, Ct, 1, 1)

    def channel_att(x):
        v = jnp.abs(x)
        cm = v.mean(axis=(2, 3))
        return x.shape[1] * jax.nn.softmax(cm / temp, axis=1)

    def texture(x):
        v = jnp.abs(x)
        fm = v.mean(axis=1)
        p = jnp.pad(fm, ((0, 0), (1, 1), (1, 1)))
        s = jnp.zeros_like(fm)
        ssq = jnp.zeros_like(fm)
        for dh in range(3):
            for dw in range(3):
                n = p[:, dh:dh + H, dw:dw + W]
                s = s + n
                ssq = ssq + n * n
        var = (ssq - s * s / 9.0) / 8.0
        sm = jax.nn.softmax((var / temp).reshape(N, -1), axis=1)
        return (H * W) * sm.reshape(N, H, W)

    c_s = channel_att(aligned)
    c_t = channel_att(preds_T)
    tex_s = texture(aligned)
    tex_t = texture(preds_T)

    mask_loss = jnp.sum(jnp.abs(c_s - c_t))
    tex_loss = jnp.sum(jnp.abs(tex_t - tex_s)) / N
    w_sp = jnp.sqrt(tex_t)[:, None, :, :]
    w_ch = jnp.sqrt(c_t)[:, :, None, None]
    a_s = aligned * w_sp * w_ch
    a_t = preds_T * w_sp * w_ch
    feat_loss = jnp.mean((a_s - a_t) ** 2) / N
    return feat_loss + 0.01 * tex_loss + 0.001 * mask_loss


if __name__ == "__main__":
    key = jax.random.PRNGKey(0)
    N, Cs, Ct, H, W = 2, 4, 8, 16, 16
    k1, k2, k3, k4 = jax.random.split(key, 4)

    preds_S = jax.random.normal(k1, (N, Cs, H, W), jnp.float32)
    preds_T = jax.random.normal(k2, (N, Ct, H, W), jnp.float32)

    # Deterministic synthetic init of the align 1x1 conv (kaiming-like scale).
    w_align = jax.random.normal(k3, (Ct, Cs), jnp.float32) / jnp.sqrt(float(Cs))
    b_align = 0.1 * jax.random.normal(k4, (Ct, 1), jnp.float32)

    # Quantize features/weight to bf16 once so the Pallas kernel (bf16 DMA /
    # bf16 MXU matmul) and the f32 reference see identical input values; the
    # remaining differences are accumulation order and exp evaluation only.
    q = lambda a: a.astype(jnp.bfloat16).astype(jnp.float32)
    preds_S, preds_T, w_align = q(preds_S), q(preds_T), q(w_align)

    # gt_bboxes / img_metas are unused by this forward variant.
    gt_bboxes = [jnp.array([[2.0, 2.0, 10.0, 10.0]], jnp.float32)] * N
    img_metas = [{"img_shape": (H, W)}] * N

    loss = feature_loss(preds_S, preds_T, gt_bboxes, img_metas,
                        w_align, b_align, temp=0.5)
    loss = jax.block_until_ready(loss)

    ref = _reference_loss(preds_S, preds_T, w_align, b_align, 0.5)
    ref = jax.block_until_ready(ref)
    np.testing.assert_allclose(np.asarray(loss), np.asarray(ref),
                               rtol=5e-3, atol=1e-6)
    print("KERNEL_OK")
</pallas_src>

<mosaic_0001>
module attributes {stable_mosaic.version = 11 : i64} {
  func.func @_fgd_loss_kernel(%arg0: i32, %arg1: memref<8x16xbf16, #tpu.memory_space<vmem>>, %arg2: memref<8x1xf32, #tpu.memory_space<vmem>>, %arg3: memref<8x256xf32, #tpu.memory_space<vmem>>, %arg4: memref<1x16x256xbf16, #tpu.memory_space<vmem>>, %arg5: memref<1x8x256xbf16, #tpu.memory_space<vmem>>, %arg6: memref<1x1x1xf32, #tpu.memory_space<vmem>>) attributes {dimension_semantics = [#tpu.dimension_semantics<parallel>], iteration_bounds = array<i64: 2>, scalar_prefetch = 0 : i64, scratch_operands = 0 : i64, tpu.core_type = #tpu.core_type<tc>, window_params = [{pipeline_mode = #tpu.pipeline_mode<synchronous>, transform_indices = @transform_0, window_bounds = array<i64: 8, 16>}, {pipeline_mode = #tpu.pipeline_mode<synchronous>, transform_indices = @transform_1, window_bounds = array<i64: 8, 1>}, {pipeline_mode = #tpu.pipeline_mode<synchronous>, transform_indices = @transform_2, window_bounds = array<i64: 8, 256>}, {transform_indices = @transform_3, window_bounds = array<i64: 1, 16, 256>}, {transform_indices = @transform_4, window_bounds = array<i64: 1, 8, 256>}, {transform_indices = @transform_5, window_bounds = array<i64: 1, 1, 1>}]} {
    %c0 = arith.constant 0 : index
    %c0_0 = arith.constant 0 : index
    %0 = vector.load %arg1[%c0, %c0_0] : memref<8x16xbf16, #tpu.memory_space<vmem>>, vector<8x16xbf16>
    %c0_1 = arith.constant 0 : index
    %c0_2 = arith.constant 0 : index
    %c0_3 = arith.constant 0 : index
    %1 = vector.load %arg4[%c0_1, %c0_2, %c0_3] : memref<1x16x256xbf16, #tpu.memory_space<vmem>>, vector<1x16x256xbf16>
    %2 = vector.shape_cast %1 : vector<1x16x256xbf16> to vector<16x256xbf16>
    %cst = arith.constant dense<0.000000e+00> : vector<8x256xf32>
    %3 = tpu.matmul %0, %2, %cst {dimension_numbers = #tpu.dot_dimension_numbers<[1], [0], [0], [1], [0, 0, 1, 1], [], []>} : vector<8x16xbf16>, vector<16x256xbf16>, vector<8x256xf32> -> vector<8x256xf32>
    %c0_4 = arith.constant 0 : index
    %c0_5 = arith.constant 0 : index
    %4 = vector.load %arg2[%c0_4, %c0_5] : memref<8x1xf32, #tpu.memory_space<vmem>>, vector<8x1xf32>
    %5 = vector.broadcast %4 : vector<8x1xf32> to vector<8x256xf32>
    %6 = arith.addf %3, %5 : vector<8x256xf32>
    %c0_6 = arith.constant 0 : index
    %c0_7 = arith.constant 0 : index
    %c0_8 = arith.constant 0 : index
    %7 = vector.load %arg5[%c0_6, %c0_7, %c0_8] : memref<1x8x256xbf16, #tpu.memory_space<vmem>>, vector<1x8x256xbf16>
    %8 = vector.shape_cast %7 : vector<1x8x256xbf16> to vector<8x256xbf16>
    %9 = arith.extf %8 : vector<8x256xbf16> to vector<8x256xf32>
    %cst_9 = arith.constant 1.000000e+00 : f32
    %10 = vector.broadcast %cst_9 : f32 to vector<256x1xf32>
    %cst_10 = arith.constant 1.000000e+00 : f32
    %11 = vector.broadcast %cst_10 : f32 to vector<1x8xf32>
    %12 = math.absf %6 : vector<8x256xf32>
    %cst_11 = arith.constant dense<0.000000e+00> : vector<8x1xf32>
    %13 = tpu.matmul %12, %10, %cst_11 {dimension_numbers = #tpu.dot_dimension_numbers<[1], [0], [0], [1], [0, 0, 1, 1], [], []>, precision = #tpu.contract_precision<fp32>} : vector<8x256xf32>, vector<256x1xf32>, vector<8x1xf32> -> vector<8x1xf32>
    %cst_12 = arith.constant dense<0.000000e+00> : vector<1x256xf32>
    %14 = tpu.matmul %11, %12, %cst_12 {dimension_numbers = #tpu.dot_dimension_numbers<[1], [0], [0], [1], [0, 0, 1, 1], [], []>, precision = #tpu.contract_precision<fp32>} : vector<1x8xf32>, vector<8x256xf32>, vector<1x256xf32> -> vector<1x256xf32>
    %cst_13 = arith.constant 3.906250e-03 : f32
    %15 = vector.broadcast %cst_13 : f32 to vector<8x1xf32>
    %16 = arith.mulf %13, %15 : vector<8x1xf32>
    %cst_14 = arith.constant 1.250000e-01 : f32
    %17 = vector.broadcast %cst_14 : f32 to vector<1x256xf32>
    %18 = arith.mulf %14, %17 : vector<1x256xf32>
    %19 = math.absf %9 : vector<8x256xf32>
    %cst_15 = arith.constant dense<0.000000e+00> : vector<8x1xf32>
    %20 = tpu.matmul %19, %10, %cst_15 {dimension_numbers = #tpu.dot_dimension_numbers<[1], [0], [0], [1], [0, 0, 1, 1], [], []>, precision = #tpu.contract_precision<fp32>} : vector<8x256xf32>, vector<256x1xf32>, vector<8x1xf32> -> vector<8x1xf32>
    %cst_16 = arith.constant dense<0.000000e+00> : vector<1x256xf32>
    %21 = tpu.matmul %11, %19, %cst_16 {dimension_numbers = #tpu.dot_dimension_numbers<[1], [0], [0], [1], [0, 0, 1, 1], [], []>, precision = #tpu.contract_precision<fp32>} : vector<1x8xf32>, vector<8x256xf32>, vector<1x256xf32> -> vector<1x256xf32>
    %cst_17 = arith.constant 3.906250e-03 : f32
    %22 = vector.broadcast %cst_17 : f32 to vector<8x1xf32>
    %23 = arith.mulf %20, %22 : vector<8x1xf32>
    %cst_18 = arith.constant 1.250000e-01 : f32
    %24 = vector.broadcast %cst_18 : f32 to vector<1x256xf32>
    %25 = arith.mulf %21, %24 : vector<1x256xf32>
    %26 = arith.subf %6, %9 : vector<8x256xf32>
    %27 = arith.mulf %26, %26 : vector<8x256xf32>
    %cst_19 = arith.constant 2.000000e+00 : f32
    %28 = vector.broadcast %cst_19 : f32 to vector<8x1xf32>
    %29 = arith.mulf %16, %28 : vector<8x1xf32>
    %cst_20 = arith.constant dense<0xFF800000> : vector<1xf32>
    %30 = vector.multi_reduction <maximumf>, %29, %cst_20 [0] : vector<8x1xf32> to vector<1xf32>
    %31 = vector.shape_cast %30 : vector<1xf32> to vector<1x1xf32>
    %32 = vector.broadcast %31 : vector<1x1xf32> to vector<8x1xf32>
    %33 = arith.subf %29, %32 : vector<8x1xf32>
    %34 = math.exp %33 : vector<8x1xf32>
    %cst_21 = arith.constant dense<0.000000e+00> : vector<1xf32>
    %35 = vector.multi_reduction <add>, %34, %cst_21 [0] : vector<8x1xf32> to vector<1xf32>
    %36 = vector.shape_cast %35 : vector<1xf32> to vector<1x1xf32>
    %cst_22 = arith.constant 1.000000e+00 : f32
    %37 = vector.broadcast %cst_22 : f32 to vector<1x1xf32>
    %38 = arith.divf %37, %36 : vector<1x1xf32>
    %cst_23 = arith.constant 8.000000e+00 : f32
    %39 = vector.broadcast %cst_23 : f32 to vector<1x1xf32>
    %40 = arith.mulf %39, %38 : vector<1x1xf32>
    %41 = vector.broadcast %40 : vector<1x1xf32> to vector<8x1xf32>
    %42 = arith.mulf %34, %41 : vector<8x1xf32>
    %cst_24 = arith.constant 2.000000e+00 : f32
    %43 = vector.broadcast %cst_24 : f32 to vector<8x1xf32>
    %44 = arith.mulf %23, %43 : vector<8x1xf32>
    %cst_25 = arith.constant dense<0xFF800000> : vector<1xf32>
    %45 = vector.multi_reduction <maximumf>, %44, %cst_25 [0] : vector<8x1xf32> to vector<1xf32>
    %46 = vector.shape_cast %45 : vector<1xf32> to vector<1x1xf32>
    %47 = vector.broadcast %46 : vector<1x1xf32> to vector<8x1xf32>
    %48 = arith.subf %44, %47 : vector<8x1xf32>
    %49 = math.exp %48 : vector<8x1xf32>
    %cst_26 = arith.constant dense<0.000000e+00> : vector<1xf32>
    %50 = vector.multi_reduction <add>, %49, %cst_26 [0] : vector<8x1xf32> to vector<1xf32>
    %51 = vector.shape_cast %50 : vector<1xf32> to vector<1x1xf32>
    %cst_27 = arith.constant 1.000000e+00 : f32
    %52 = vector.broadcast %cst_27 : f32 to vector<1x1xf32>
    %53 = arith.divf %52, %51 : vector<1x1xf32>
    %cst_28 = arith.constant 8.000000e+00 : f32
    %54 = vector.broadcast %cst_28 : f32 to vector<1x1xf32>
    %55 = arith.mulf %54, %53 : vector<1x1xf32>
    %56 = vector.broadcast %55 : vector<1x1xf32> to vector<8x1xf32>
    %57 = arith.mulf %49, %56 : vector<8x1xf32>
    %58 = arith.mulf %18, %18 : vector<1x256xf32>
    %c17_i32 = arith.constant 17 : i32
    %59 = tpu.dynamic_rotate %18 by %c17_i32 dim 1 : vector<1x256xf32>, i32 -> vector<1x256xf32>
    %c0_29 = arith.constant 0 : index
    %c0_30 = arith.constant 0 : index
    %60 = vector.load %arg3[%c0_29, %c0_30] : memref<8x256xf32, #tpu.memory_space<vmem>>, vector<1x256xf32>
    %61 = arith.mulf %59, %60 : vector<1x256xf32>
    %62 = arith.addf %18, %61 : vector<1x256xf32>
    %63 = arith.mulf %61, %61 : vector<1x256xf32>
    %64 = arith.addf %58, %63 : vector<1x256xf32>
    %c16_i32 = arith.constant 16 : i32
    %65 = tpu.dynamic_rotate %18 by %c16_i32 dim 1 : vector<1x256xf32>, i32 -> vector<1x256xf32>
    %c1 = arith.constant 1 : index
    %c0_31 = arith.constant 0 : index
    %66 = vector.load %arg3[%c1, %c0_31] : memref<8x256xf32, #tpu.memory_space<vmem>>, vector<1x256xf32>
    %67 = arith.mulf %65, %66 : vector<1x256xf32>
    %68 = arith.addf %62, %67 : vector<1x256xf32>
    %69 = arith.mulf %67, %67 : vector<1x256xf32>
    %70 = arith.addf %64, %69 : vector<1x256xf32>
    %c15_i32 = arith.constant 15 : i32
    %71 = tpu.dynamic_rotate %18 by %c15_i32 dim 1 : vector<1x256xf32>, i32 -> vector<1x256xf32>
    %c2 = arith.constant 2 : index
    %c0_32 = arith.constant 0 : index
    %72 = vector.load %arg3[%c2, %c0_32] : memref<8x256xf32, #tpu.memory_space<vmem>>, vector<1x256xf32>
    %73 = arith.mulf %71, %72 : vector<1x256xf32>
    %74 = arith.addf %68, %73 : vector<1x256xf32>
    %75 = arith.mulf %73, %73 : vector<1x256xf32>
    %76 = arith.addf %70, %75 : vector<1x256xf32>
    %c1_i32 = arith.constant 1 : i32
    %77 = tpu.dynamic_rotate %18 by %c1_i32 dim 1 : vector<1x256xf32>, i32 -> vector<1x256xf32>
    %c3 = arith.constant 3 : index
    %c0_33 = arith.constant 0 : index
    %78 = vector.load %arg3[%c3, %c0_33] : memref<8x256xf32, #tpu.memory_space<vmem>>, vector<1x256xf32>
    %79 = arith.mulf %77, %78 : vector<1x256xf32>
    %80 = arith.addf %74, %79 : vector<1x256xf32>
    %81 = arith.mulf %79, %79 : vector<1x256xf32>
    %82 = arith.addf %76, %81 : vector<1x256xf32>
    %c255_i32 = arith.constant 255 : i32
    %83 = tpu.dynamic_rotate %18 by %c255_i32 dim 1 : vector<1x256xf32>, i32 -> vector<1x256xf32>
    %c4 = arith.constant 4 : index
    %c0_34 = arith.constant 0 : index
    %84 = vector.load %arg3[%c4, %c0_34] : memref<8x256xf32, #tpu.memory_space<vmem>>, vector<1x256xf32>
    %85 = arith.mulf %83, %84 : vector<1x256xf32>
    %86 = arith.addf %80, %85 : vector<1x256xf32>
    %87 = arith.mulf %85, %85 : vector<1x256xf32>
    %88 = arith.addf %82, %87 : vector<1x256xf32>
    %c241_i32 = arith.constant 241 : i32
    %89 = tpu.dynamic_rotate %18 by %c241_i32 dim 1 : vector<1x256xf32>, i32 -> vector<1x256xf32>
    %c5 = arith.constant 5 : index
    %c0_35 = arith.constant 0 : index
    %90 = vector.load %arg3[%c5, %c0_35] : memref<8x256xf32, #tpu.memory_space<vmem>>, vector<1x256xf32>
    %91 = arith.mulf %89, %90 : vector<1x256xf32>
    %92 = arith.addf %86, %91 : vector<1x256xf32>
    %93 = arith.mulf %91, %91 : vector<1x256xf32>
    %94 = arith.addf %88, %93 : vector<1x256xf32>
    %c240_i32 = arith.constant 240 : i32
    %95 = tpu.dynamic_rotate %18 by %c240_i32 dim 1 : vector<1x256xf32>, i32 -> vector<1x256xf32>
    %c6 = arith.constant 6 : index
    %c0_36 = arith.constant 0 : index
    %96 = vector.load %arg3[%c6, %c0_36] : memref<8x256xf32, #tpu.memory_space<vmem>>, vector<1x256xf32>
    %97 = arith.mulf %95, %96 : vector<1x256xf32>
    %98 = arith.addf %92, %97 : vector<1x256xf32>
    %99 = arith.mulf %97, %97 : vector<1x256xf32>
    %100 = arith.addf %94, %99 : vector<1x256xf32>
    %c239_i32 = arith.constant 239 : i32
    %101 = tpu.dynamic_rotate %18 by %c239_i32 dim 1 : vector<1x256xf32>, i32 -> vector<1x256xf32>
    %c7 = arith.constant 7 : index
    %c0_37 = arith.constant 0 : index
    %102 = vector.load %arg3[%c7, %c0_37] : memref<8x256xf32, #tpu.memory_space<vmem>>, vector<1x256xf32>
    %103 = arith.mulf %101, %102 : vector<1x256xf32>
    %104 = arith.addf %98, %103 : vector<1x256xf32>
    %105 = arith.mulf %103, %103 : vector<1x256xf32>
    %106 = arith.addf %100, %105 : vector<1x256xf32>
    %107 = arith.mulf %104, %104 : vector<1x256xf32>
    %cst_38 = arith.constant 0.111111112 : f32
    %108 = vector.broadcast %cst_38 : f32 to vector<1x256xf32>
    %109 = arith.mulf %107, %108 : vector<1x256xf32>
    %110 = arith.subf %106, %109 : vector<1x256xf32>
    %cst_39 = arith.constant 1.250000e-01 : f32
    %111 = vector.broadcast %cst_39 : f32 to vector<1x256xf32>
    %112 = arith.mulf %110, %111 : vector<1x256xf32>
    %cst_40 = arith.constant 2.000000e+00 : f32
    %113 = vector.broadcast %cst_40 : f32 to vector<1x256xf32>
    %114 = arith.mulf %112, %113 : vector<1x256xf32>
    %cst_41 = arith.constant dense<0xFF800000> : vector<1xf32>
    %115 = vector.multi_reduction <maximumf>, %114, %cst_41 [1] : vector<1x256xf32> to vector<1xf32>
    %116 = vector.shape_cast %115 : vector<1xf32> to vector<1x1xf32>
    %117 = vector.broadcast %116 : vector<1x1xf32> to vector<1x256xf32>
    %118 = arith.subf %114, %117 : vector<1x256xf32>
    %119 = math.exp %118 : vector<1x256xf32>
    %cst_42 = arith.constant dense<0.000000e+00> : vector<1xf32>
    %120 = vector.multi_reduction <add>, %119, %cst_42 [1] : vector<1x256xf32> to vector<1xf32>
    %121 = vector.shape_cast %120 : vector<1xf32> to vector<1x1xf32>
    %cst_43 = arith.constant 1.000000e+00 : f32
    %122 = vector.broadcast %cst_43 : f32 to vector<1x1xf32>
    %123 = arith.divf %122, %121 : vector<1x1xf32>
    %cst_44 = arith.constant 2.560000e+02 : f32
    %124 = vector.broadcast %cst_44 : f32 to vector<1x1xf32>
    %125 = arith.mulf %124, %123 : vector<1x1xf32>
    %126 = vector.broadcast %125 : vector<1x1xf32> to vector<1x256xf32>
    %127 = arith.mulf %119, %126 : vector<1x256xf32>
    %128 = arith.mulf %25, %25 : vector<1x256xf32>
    %c17_i32_45 = arith.constant 17 : i32
    %129 = tpu.dynamic_rotate %25 by %c17_i32_45 dim 1 : vector<1x256xf32>, i32 -> vector<1x256xf32>
    %c0_46 = arith.constant 0 : index
    %c0_47 = arith.constant 0 : index
    %130 = vector.load %arg3[%c0_46, %c0_47] : memref<8x256xf32, #tpu.memory_space<vmem>>, vector<1x256xf32>
    %131 = arith.mulf %129, %130 : vector<1x256xf32>
    %132 = arith.addf %25, %131 : vector<1x256xf32>
    %133 = arith.mulf %131, %131 : vector<1x256xf32>
    %134 = arith.addf %128, %133 : vector<1x256xf32>
    %c16_i32_48 = arith.constant 16 : i32
    %135 = tpu.dynamic_rotate %25 by %c16_i32_48 dim 1 : vector<1x256xf32>, i32 -> vector<1x256xf32>
    %c1_49 = arith.constant 1 : index
    %c0_50 = arith.constant 0 : index
    %136 = vector.load %arg3[%c1_49, %c0_50] : memref<8x256xf32, #tpu.memory_space<vmem>>, vector<1x256xf32>
    %137 = arith.mulf %135, %136 : vector<1x256xf32>
    %138 = arith.addf %132, %137 : vector<1x256xf32>
    %139 = arith.mulf %137, %137 : vector<1x256xf32>
    %140 = arith.addf %134, %139 : vector<1x256xf32>
    %c15_i32_51 = arith.constant 15 : i32
    %141 = tpu.dynamic_rotate %25 by %c15_i32_51 dim 1 : vector<1x256xf32>, i32 -> vector<1x256xf32>
    %c2_52 = arith.constant 2 : index
    %c0_53 = arith.constant 0 : index
    %142 = vector.load %arg3[%c2_52, %c0_53] : memref<8x256xf32, #tpu.memory_space<vmem>>, vector<1x256xf32>
    %143 = arith.mulf %141, %142 : vector<1x256xf32>
    %144 = arith.addf %138, %143 : vector<1x256xf32>
    %145 = arith.mulf %143, %143 : vector<1x256xf32>
    %146 = arith.addf %140, %145 : vector<1x256xf32>
    %c1_i32_54 = arith.constant 1 : i32
    %147 = tpu.dynamic_rotate %25 by %c1_i32_54 dim 1 : vector<1x256xf32>, i32 -> vector<1x256xf32>
    %c3_55 = arith.constant 3 : index
    %c0_56 = arith.constant 0 : index
    %148 = vector.load %arg3[%c3_55, %c0_56] : memref<8x256xf32, #tpu.memory_space<vmem>>, vector<1x256xf32>
    %149 = arith.mulf %147, %148 : vector<1x256xf32>
    %150 = arith.addf %144, %149 : vector<1x256xf32>
    %151 = arith.mulf %149, %149 : vector<1x256xf32>
    %152 = arith.addf %146, %151 : vector<1x256xf32>
    %c255_i32_57 = arith.constant 255 : i32
    %153 = tpu.dynamic_rotate %25 by %c255_i32_57 dim 1 : vector<1x256xf32>, i32 -> vector<1x256xf32>
    %c4_58 = arith.constant 4 : index
    %c0_59 = arith.constant 0 : index
    %154 = vector.load %arg3[%c4_58, %c0_59] : memref<8x256xf32, #tpu.memory_space<vmem>>, vector<1x256xf32>
    %155 = arith.mulf %153, %154 : vector<1x256xf32>
    %156 = arith.addf %150, %155 : vector<1x256xf32>
    %157 = arith.mulf %155, %155 : vector<1x256xf32>
    %158 = arith.addf %152, %157 : vector<1x256xf32>
    %c241_i32_60 = arith.constant 241 : i32
    %159 = tpu.dynamic_rotate %25 by %c241_i32_60 dim 1 : vector<1x256xf32>, i32 -> vector<1x256xf32>
    %c5_61 = arith.constant 5 : index
    %c0_62 = arith.constant 0 : index
    %160 = vector.load %arg3[%c5_61, %c0_62] : memref<8x256xf32, #tpu.memory_space<vmem>>, vector<1x256xf32>
    %161 = arith.mulf %159, %160 : vector<1x256xf32>
    %162 = arith.addf %156, %161 : vector<1x256xf32>
    %163 = arith.mulf %161, %161 : vector<1x256xf32>
    %164 = arith.addf %158, %163 : vector<1x256xf32>
    %c240_i32_63 = arith.constant 240 : i32
    %165 = tpu.dynamic_rotate %25 by %c240_i32_63 dim 1 : vector<1x256xf32>, i32 -> vector<1x256xf32>
    %c6_64 = arith.constant 6 : index
    %c0_65 = arith.constant 0 : index
    %166 = vector.load %arg3[%c6_64, %c0_65] : memref<8x256xf32, #tpu.memory_space<vmem>>, vector<1x256xf32>
    %167 = arith.mulf %165, %166 : vector<1x256xf32>
    %168 = arith.addf %162, %167 : vector<1x256xf32>
    %169 = arith.mulf %167, %167 : vector<1x256xf32>
    %170 = arith.addf %164, %169 : vector<1x256xf32>
    %c239_i32_66 = arith.constant 239 : i32
    %171 = tpu.dynamic_rotate %25 by %c239_i32_66 dim 1 : vector<1x256xf32>, i32 -> vector<1x256xf32>
    %c7_67 = arith.constant 7 : index
    %c0_68 = arith.constant 0 : index
    %172 = vector.load %arg3[%c7_67, %c0_68] : memref<8x256xf32, #tpu.memory_space<vmem>>, vector<1x256xf32>
    %173 = arith.mulf %171, %172 : vector<1x256xf32>
    %174 = arith.addf %168, %173 : vector<1x256xf32>
    %175 = arith.mulf %173, %173 : vector<1x256xf32>
    %176 = arith.addf %170, %175 : vector<1x256xf32>
    %177 = arith.mulf %174, %174 : vector<1x256xf32>
    %cst_69 = arith.constant 0.111111112 : f32
    %178 = vector.broadcast %cst_69 : f32 to vector<1x256xf32>
    %179 = arith.mulf %177, %178 : vector<1x256xf32>
    %180 = arith.subf %176, %179 : vector<1x256xf32>
    %cst_70 = arith.constant 1.250000e-01 : f32
    %181 = vector.broadcast %cst_70 : f32 to vector<1x256xf32>
    %182 = arith.mulf %180, %181 : vector<1x256xf32>
    %cst_71 = arith.constant 2.000000e+00 : f32
    %183 = vector.broadcast %cst_71 : f32 to vector<1x256xf32>
    %184 = arith.mulf %182, %183 : vector<1x256xf32>
    %cst_72 = arith.constant dense<0xFF800000> : vector<1xf32>
    %185 = vector.multi_reduction <maximumf>, %184, %cst_72 [1] : vector<1x256xf32> to vector<1xf32>
    %186 = vector.shape_cast %185 : vector<1xf32> to vector<1x1xf32>
    %187 = vector.broadcast %186 : vector<1x1xf32> to vector<1x256xf32>
    %188 = arith.subf %184, %187 : vector<1x256xf32>
    %189 = math.exp %188 : vector<1x256xf32>
    %cst_73 = arith.constant dense<0.000000e+00> : vector<1xf32>
    %190 = vector.multi_reduction <add>, %189, %cst_73 [1] : vector<1x256xf32> to vector<1xf32>
    %191 = vector.shape_cast %190 : vector<1xf32> to vector<1x1xf32>
    %cst_74 = arith.constant 1.000000e+00 : f32
    %192 = vector.broadcast %cst_74 : f32 to vector<1x1xf32>
    %193 = arith.divf %192, %191 : vector<1x1xf32>
    %cst_75 = arith.constant 2.560000e+02 : f32
    %194 = vector.broadcast %cst_75 : f32 to vector<1x1xf32>
    %195 = arith.mulf %194, %193 : vector<1x1xf32>
    %196 = vector.broadcast %195 : vector<1x1xf32> to vector<1x256xf32>
    %197 = arith.mulf %189, %196 : vector<1x256xf32>
    %198 = arith.subf %42, %57 : vector<8x1xf32>
    %199 = math.absf %198 : vector<8x1xf32>
    %200 = vector.shape_cast %199 : vector<8x1xf32> to vector<1x8x1xf32>
    %cst_76 = arith.constant dense<0.000000e+00> : vector<1xf32>
    %201 = vector.multi_reduction <add>, %200, %cst_76 [1, 2] : vector<1x8x1xf32> to vector<1xf32>
    %202 = vector.shape_cast %201 : vector<1xf32> to vector<1x1x1xf32>
    %203 = vector.extract %202[0, 0, 0] : f32 from vector<1x1x1xf32>
    %204 = arith.subf %197, %127 : vector<1x256xf32>
    %205 = math.absf %204 : vector<1x256xf32>
    %206 = vector.shape_cast %205 : vector<1x256xf32> to vector<1x1x256xf32>
    %cst_77 = arith.constant dense<0.000000e+00> : vector<1xf32>
    %207 = vector.multi_reduction <add>, %206, %cst_77 [1, 2] : vector<1x1x256xf32> to vector<1xf32>
    %208 = vector.shape_cast %207 : vector<1xf32> to vector<1x1x1xf32>
    %209 = vector.extract %208[0, 0, 0] : f32 from vector<1x1x1xf32>
    %210 = tpu.transpose %57, [1, 0] : vector<8x1xf32> -> vector<1x8xf32>
    %cst_78 = arith.constant dense<0.000000e+00> : vector<1x256xf32>
    %211 = tpu.matmul %210, %27, %cst_78 {dimension_numbers = #tpu.dot_dimension_numbers<[1], [0], [0], [1], [0, 0, 1, 1], [], []>, precision = #tpu.contract_precision<fp32>} : vector<1x8xf32>, vector<8x256xf32>, vector<1x256xf32> -> vector<1x256xf32>
    %212 = arith.mulf %211, %197 : vector<1x256xf32>
    %213 = vector.shape_cast %212 : vector<1x256xf32> to vector<1x1x256xf32>
    %cst_79 = arith.constant dense<0.000000e+00> : vector<1xf32>
    %214 = vector.multi_reduction <add>, %213, %cst_79 [1, 2] : vector<1x1x256xf32> to vector<1xf32>
    %215 = vector.shape_cast %214 : vector<1xf32> to vector<1x1x1xf32>
    %216 = vector.extract %215[0, 0, 0] : f32 from vector<1x1x1xf32>
    %cst_80 = arith.constant 1.22070313E-4 : f32
    %217 = arith.mulf %216, %cst_80 : f32
    %cst_81 = arith.constant 5.000000e-03 : f32
    %218 = arith.mulf %cst_81, %209 : f32
    %219 = arith.addf %217, %218 : f32
    %cst_82 = arith.constant 1.000000e-03 : f32
    %220 = arith.mulf %cst_82, %203 : f32
    %221 = arith.addf %219, %220 : f32
    %cst_83 = arith.constant 0.000000e+00 : f32
    %222 = vector.broadcast %cst_83 : f32 to vector<1x1xf32>
    %223 = vector.broadcast %221 : f32 to vector<1x1xf32>
    %224 = arith.addf %222, %223 : vector<1x1xf32>
    %c0_84 = arith.constant 0 : index
    %c0_85 = arith.constant 0 : index
    %c0_86 = arith.constant 0 : index
    %225 = vector.load %arg6[%c0_84, %c0_85, %c0_86] : memref<1x1x1xf32, #tpu.memory_space<vmem>>, vector<1x1x1xf32>
    %226 = vector.shape_cast %225 : vector<1x1x1xf32> to vector<1x1xf32>
    %227 = vector.shape_cast %224 : vector<1x1xf32> to vector<1x1x1xf32>
    tpu.vector_store %arg6[%c0_84, %c0_85, %c0_86], %227 {strides = array<i32>} : memref<1x1x1xf32, #tpu.memory_space<vmem>>, vector<1x1x1xf32>,
    return
  }
  func.func @transform_0(%arg0: i32) -> (i32, i32) {
    %c0_i32 = arith.constant 0 : i32
    %c0_i32_0 = arith.constant 0 : i32
    %c0_i32_1 = arith.constant 0 : i32
    return %c0_i32, %c0_i32_0 : i32, i32
  }
  func.func @transform_1(%arg0: i32) -> (i32, i32) {
    %c0_i32 = arith.constant 0 : i32
    %c0_i32_0 = arith.constant 0 : i32
    %c0_i32_1 = arith.constant 0 : i32
    return %c0_i32, %c0_i32_0 : i32, i32
  }
  func.func @transform_2(%arg0: i32) -> (i32, i32) {
    %c0_i32 = arith.constant 0 : i32
    %c0_i32_0 = arith.constant 0 : i32
    %c0_i32_1 = arith.constant 0 : i32
    return %c0_i32, %c0_i32_0 : i32, i32
  }
  func.func @transform_3(%arg0: i32) -> (i32, i32, i32) {
    %c0_i32 = arith.constant 0 : i32
    %c0_i32_0 = arith.constant 0 : i32
    %c0_i32_1 = arith.constant 0 : i32
    return %arg0, %c0_i32, %c0_i32_0 : i32, i32, i32
  }
  func.func @transform_4(%arg0: i32) -> (i32, i32, i32) {
    %c0_i32 = arith.constant 0 : i32
    %c0_i32_0 = arith.constant 0 : i32
    %c0_i32_1 = arith.constant 0 : i32
    return %arg0, %c0_i32, %c0_i32_0 : i32, i32, i32
  }
  func.func @transform_5(%arg0: i32) -> (i32, i32, i32) {
    %c0_i32 = arith.constant 0 : i32
    %c0_i32_0 = arith.constant 0 : i32
    %c0_i32_1 = arith.constant 0 : i32
    return %arg0, %c0_i32, %c0_i32_0 : i32, i32, i32
  }
}

</mosaic_0001>

<bundles_post_ra>
// kernel: tpu_custom_call.1
= control target key start
LH: loop header
LB: loop body
LE: loop exit
PB: predicated region body
PF: predicated region fallthrough
CT: control target
= control target key end

     0   :  { %10 = vsyncpa [#allocation3], 0  ;;  %s3533_s0 = inlined_call_operand.vmem [shape: bf16[8,16], index: 0, kind: input, shape index: {}]   ;;  %s3534_s1 = inlined_call_operand.vmem [shape: f32[8,1], index: 1, kind: input, shape index: {}]   ;;  %s3535_s2 = inlined_call_operand.hbm [shape: f32[8,256], index: 2, kind: input, shape index: {}]   ;;  %s3536_s3 = inlined_call_operand.hbm [shape: bf16[2,16,256], index: 3, kind: input, shape index: {}]   ;;  %s3537_s4 = inlined_call_operand.hbm [shape: bf16[2,8,256], index: 4, kind: input, shape index: {}]   ;;  %s3538_s5 = inlined_call_operand.vmem [shape: f32[2,1,1], index: 5, kind: output, shape index: {}]  }
   0x1   :  { %11 = vsyncpa [#allocation5], 0 }
   0x2   :  { %13 = vsyncpa [#allocation5 + $0x1], 0  ;;  %s2691_s18 = smov 0   ;;  %s2693_s19 = smov 0  }
   0x3   :  { %s2695_s20 = smov 0   ;;  %s2697_s21 = smov 0  }
   0x4 LB: > { %s2712_s22 = sadd.s32 1, %s2645_s21   ;;  %s89_s23 = sadd.s32 1, %s2641_s20  ;;  %s2645_s21 = sphi %s2697_s21, %s3545_s21   ;;  %s2641_s20 = sphi %s2695_s20, %s3544_s20   ;;  %s2637_s19 = sphi %s2693_s19, %s3543_s19   ;;  %s2633_s18 = sphi %s2691_s18, %s3542_s18  }
   0x5   : > { %s86_s24 = ssub.s32 %s2645_s21, %s2712_s22  ;;  %p96_p0 = scmp.ne.s32.totalorder %s2641_s20, %s2637_s19 }
   0x6   : > { %p87_p1 = scmp.eq.s32.totalorder %s86_s24, 0  ;;  %p97_p2 = scmp.eq.s32.totalorder %s2645_s21, 0 }
   0x7   : > { %p2448_p3 = scmp.lt.s32.totalorder %s2645_s21, 2  ;;  %s196_s26 = sand.u32 1, %s2645_s21  }
   0x8   : > { %s2722_s25 = scalar_select %p87_p1, %s2641_s20, %s89_s23  }
   0x9   : > { %p98_p4 = por %p97_p2, %p96_p0  ;;  %s198_s27 = sand.u32 1, %s2641_s20  }
   0xa   : > { %s2384_s28 = sshll.u32 %s198_s27, 4  ;;  %s2418_s29 = sshll.u32 %s2645_s21, 4 }
   0xb   : > { %s205_s7 = scalar_lea.hbm %s3536_s3, %s2418_s29  ;;  %s200_s9 = scalar_lea.vmem [#allocation4], %s2384_s28 }
   0xc   : > { %s206_s8 = sshll.u32 %s205_s7, 4  ;;  %s208_s10 = sshll.u32 %s200_s9, 4  ;;  %s207_s8 = int_to_ptr.hbm [resolvable:$true] %s206_s8  ;;  %s209_s10 = int_to_ptr.vmem [resolvable:$true] %s208_s10 }
   0xd   : > { %p2734_p5 = pnand %p2448_p3, %p98_p4  ;;  %s2738_s12 = scalar_lea.sflag [#allocation5], %s196_s26 }
   0xe   : > { %s2517_s13 = sshra.s32 %s207_s8, 4  ;;  %s2524_s17 = scalar_lea.hbm %s3536_s3, 32  ;;  %s2518_s13 = int_to_ptr.hbm [resolvable:$true] %s2517_s13 }
   0xf   : > { %s2519_s14 = scalar_lea.hbm %s2518_s13, 16  ;;  %p2521_p7 = pneg %p2734_p5 }
  0x10   : > { %p2520_p6 = scmp.ne.s32.totalorder %s2518_s13, %s2519_s14  ;;  %p2525_p10 = scmp.lt.s32.totalorder %s2518_s13, %s3536_s3 }
  0x11   : > { %p2526_p11 = scmp.lt.s32.totalorder %s2524_s17, %s2519_s14 }
  0x12   : > { %p2522_p8 = pnand %p2521_p7, %p2520_p6 }
  0x13   : > { %p2527_p12 = por %p2526_p11, %p2525_p10 }
  0x14   : > { %p2523_p9 = pneg %p2522_p8 }
  0x16   : > { %p2528_p13 = pnand %p2527_p12, %p2523_p9 }
  0x18   : > { %2531 = shalt.err (!%p2528_p13)
}
  0x19   : > { %s2647_s26 = smov 128   ;;  %s2648_s28 = smov 8  }
  0x1a   : > { %2443 = dma.hbm_to_vmem [thread:$0]  (!%p2734_p5), %s207_s8, 256, %s209_s10, %s2738_s12, %s2647_s26, %s2647_s26, %s2648_s28  }
  0x1b   : > { %s2755_s29 = sadd.s32 4294967295, %s2645_s21   ;;  %p102_p0 = scmp.ne.s32.totalorder %s2637_s19, %s2633_s18 }
  0x1c   : > { %p103_p1 = scmp.eq.s32.totalorder %s2755_s29, 0  ;;  %p2381_p2 = scmp.ge.s32.totalorder %s2645_s21, 1 }
  0x1d   : > { %p165_p3 = scmp.lt.s32.totalorder %s2645_s21, 3  ;;  %s183_s9 = sshll.u32 %s3535_s2, 4  ;;  %s184_s9 = int_to_ptr.hbm [resolvable:$true] %s183_s9 }
  0x1e   : > { %p2764_p4 = por %p103_p1, %p102_p0  ;;  %s2387_s18 = sshll.u32 %s198_s27, 3 }
  0x1f   : > { %p2771_p6 = pnand %p2381_p2, %p165_p3  ;;  %s2649_s10 = smov [#allocation2]  }
  0x20   : > { %s185_s13 = sshll.u32 %s2649_s10, 4  ;;  %s2419_s14 = sshll.u32 %s2645_s21, 3  ;;  %s186_s13 = int_to_ptr.vmem [resolvable:$true] %s185_s13 }
  0x21   : > { %p2436_p8 = pneg %p2771_p6  ;;  %s227_s17 = scalar_lea.hbm %s3537_s4, %s2419_s14 }
  0x22   : > { %s222_s23 = scalar_lea.vmem [#allocation6], %s2387_s18  ;;  %s229_s26 = sshll.u32 %s227_s17, 4  ;;  %s230_s26 = int_to_ptr.hbm [resolvable:$true] %s229_s26 }
  0x23   : > { %p2437_p9 = pnand %p2436_p8, %p103_p1  ;;  %s231_s24 = sshll.u32 %s222_s23, 4  ;;  %s232_s24 = int_to_ptr.vmem [resolvable:$true] %s231_s24 }
  0x24   : > { %s2577_s27 = sshra.s32 %s230_s26, 4  ;;  %s2584_s7 = scalar_lea.hbm %s3537_s4, 16  ;;  %s2578_s27 = int_to_ptr.hbm [resolvable:$true] %s2577_s27 }
  0x25   : > { %2439 = dma.hbm_to_vmem [thread:$0]  (!%p2437_p9), %s184_s9, 256, %s186_s13, [#allocation3]  }
  0x26   : > { %s2579_s28 = scalar_lea.hbm %s2578_s27, 8  ;;  %p2585_p13 = scmp.lt.s32.totalorder %s2578_s27, %s3537_s4 }
  0x27   : > { %p2580_p10 = scmp.ne.s32.totalorder %s2578_s27, %s2579_s28  ;;  %p2586_p0 = scmp.lt.s32.totalorder %s2584_s7, %s2579_s28 }
  0x29   : > { %p2582_p11 = pnand %p2580_p10, %p2521_p7  ;;  %p2587_p2 = por %p2586_p0, %p2585_p13 }
  0x2b   : > { %p2583_p12 = pneg %p2582_p11 }
  0x2d   : > { %p2588_p3 = pnand %p2587_p2, %p2583_p12 }
  0x2f   : > { %2591 = shalt.err (!%p2588_p3)
}
  0x30   : > { %2446 = dma.hbm_to_vmem [thread:$0]  (!%p2734_p5), %s230_s26, 128, %s232_s24, %s2738_s12  }
  0x31   : > { %240 = sbr.rel (%p2771_p6) target bundleno = 1121 (0x461), region = 40 }
  0x36   : > { %2624 = dma.done.wait (%p103_p1), [#allocation3], 256  }
  0x37   : > { %2626 = vsyncadd (%p103_p1), [#allocation3], 4294967040  ;;  %s247_s9 = sand.u32 1, %s2755_s29   ;;  %s249_s18 = sand.u32 1, %s2637_s19  }
  0x38   : > { %s2392_s13 = sshll.u32 %s249_s18, 4  ;;  %s248_s11 = scalar_lea.sflag [#allocation5], %s247_s9 }
  0x39   : > { %s251_s15 = scalar_lea.vmem [#allocation4], %s2392_s13 }
  0x3a   : > { %2628 = dma.done.wait (%p2764_p4), %s248_s11, 384  }
  0x3b   : > { %2630 = vsyncadd (%p2764_p4), %s248_s11, 4294966912  ;;  %v2650_v0 = vmov 0   ;;  %v2651_v1 = vmov 1.0   ;;  %v2396_v2 = vld [vmem:[%s251_s15] sm:$0xf]  ;;  %vm315_vm0 = vcmask 130048  }
  0x3c   : > { %2496 = vset.pattern.permute.xlu0 %v2650_v0  ;;  %350 = vmatpush.msra.mxu2 %v2651_v1  ;;  %v2421_v3 = vld [vmem:[%s251_s15 + $0x4] sm:$0xf0]  ;;  %v2420_v4 = vld [vmem:[%s251_s15 + $0x4] sm:$0xf]  ;;  %v2398_v6 = vld [vmem:[%s251_s15 + $0x8] sm:$0xf0] }
  0x3d   : > { %v2397_v5 = vor.u32 %v2421_v3, %v2396_v2  ;;  %v299_v7 = vld [vmem:[%s3534_s1] sm:$0xff]  ;;  %v2401_v8 = vor.u32 %v2420_v4, %v2398_v6  ;;  %v2652_v10 = vmov 0.0   ;;  %vm616_vm1 = vcmask 64512   ;;  %s2393_s17 = sshll.u32 %s249_s18, 3  ;;  %s2653_s24 = smov 1  }
  0x3e   : > { %351 = vmatpush.msra.mxu2 %v2651_v1  ;;  %302 = vperm.xlu0 %2496, %v299_v7   ;;  %v296_v9 = vld [vmem:[%s3533_s0] sm:$0xf]  ;;  %v618_v20 = vsel %vm616_vm1, 1.0, %v2650_v0  ;;  %s261_s23 = scalar_lea.vmem [#allocation6], %s2393_s17  ;;  %s2654_s26 = smov 16   ;;  %vm1459_vm2 = vcmask 7168  }
  0x3f   : > { %326 = vmatpush.bf16.msra.mxu0 %v2397_v5  ;;  %339 = vmatpush.bf16.msra.mxu1 %v2401_v8  ;;  %v2905_v25 = vsub.f32 %v618_v20, %v618_v20  ;;  %v2956_v33 = vld [vmem:[%s261_s23] sm:$0xff]  ;;  %s2655_s27 = smov 17   ;;  %s2656_s28 = smov 127  }
  0x40   : > { %352 = vmatpush.msra.mxu2 %v2651_v1  ;;  %390 = vmatpush.msra.mxu3 %v2652_v10  ;;  %v346_v34 = vunpack.c.l.bf16 %v2956_v33  ;;  %v347_v42 = vunpack.c.h.bf16 %v2956_v33  ;;  %s2657_s6 = smov 15   ;;  %s2658_s21 = smov 113  }
  0x41   : > { %v2916_v29 = vand.u32 4294901760, %v2905_v25  ;;  %s2659_s7 = smov 112   ;;  %s2660_s10 = smov 111  }
  0x42   : > { %353 = vmatpush.msra.mxu2 %v2651_v1  ;;  %2402 = vmatmul.msk.bf16.vlgmr.msra.gmra.mxu0 %vm315_vm0, %v296_v9  ;;  %v2970_v35 = vand.u32 2147483647, %v346_v34  ;;  %v3042_v43 = vand.u32 2147483647, %v347_v42  ;;  %p292_p5 = scmp.lt.s32.totalorder %s2755_s29, 1 }
  0x43   : > { %418 = vmatpush.msrb.mxu0 %v2651_v1  ;;  %462 = vmatpush.msrb.mxu1 %v2651_v1  ;;  %v640_v31 = vsub.f32 %v2905_v25, %v2916_v29 }
  0x44   : > { %354 = vmatpush.msra.mxu2 %v2651_v1  ;;  %2403 = vmatmul.msk.bf16.vlgmr.msra.gmra.mxu1 %vm315_vm0, %v296_v9  ;;  %v2985_v37 = vsub.f32 %v2970_v35, %v2970_v35  ;;  %v3062_v44 = vsub.f32 %v3042_v43, %v3042_v43  ;;  %s3547_s29 = smov (!%p292_p5, %s2755_s29), 1 }
  0x45   : > { %419 = vmatpush.msrb.mxu0 %v2651_v1  ;;  %463 = vmatpush.msrb.mxu1 %v2651_v1  ;;  %v2936_v32 = vand.u32 4294901760, %v640_v31  ;;  %s294_s16 = scalar_lea.vmem %s3538_s5, %s3547_s29 }
  0x46   : > { %355 = vmatpush.msra.mxu2 %v2651_v1  ;;  %411 = vmatpush.msrb.mxu3 %v2652_v10  ;;  %v3012_v39 = vand.u32 4294901760, %v2985_v37  ;;  %v3073_v45 = vand.u32 4294901760, %v3062_v44 }
  0x47   : > { %420 = vmatpush.msrb.mxu0 %v2651_v1  ;;  %464 = vmatpush.msrb.mxu1 %v2651_v1 }
  0x48   : > { %356 = vmatpush.msra.mxu2 %v2651_v1  ;;  %v935_v40 = vsub.f32 %v2985_v37, %v3012_v39  ;;  %v1062_v46 = vsub.f32 %v3062_v44, %v3073_v45 }
  0x49   : > { %421 = vmatpush.msrb.mxu0 %v2651_v1  ;;  %465 = vmatpush.msrb.mxu1 %v2651_v1 }
  0x4a   : > { %357 = vmatpush.msra.mxu2 %v2651_v1  ;;  %v3027_v41 = vand.u32 4294901760, %v935_v40  ;;  %v1063_v47 = vand.u32 4294901760, %v1062_v46 }
  0x4b   : > { %422 = vmatpush.msrb.mxu0 %v2651_v1  ;;  %466 = vmatpush.msrb.mxu1 %v2651_v1 }
  0x4c   : > { %358 = vmatpush.msra.mxu2 %v2651_v1 }
  0x4d   : > { %423 = vmatpush.msrb.mxu0 %v2651_v1  ;;  %467 = vmatpush.msrb.mxu1 %v2651_v1 }
  0x4e   : > { %359 = vmatpush.msra.mxu2 %v2651_v1 }
  0x4f   : > { %424 = vmatpush.msrb.mxu0 %v2651_v1  ;;  %468 = vmatpush.msrb.mxu1 %v2651_v1 }
  0x50   : > { %360 = vmatpush.msra.mxu2 %v2651_v1 }
  0x51   : > { %425 = vmatpush.msrb.mxu0 %v2651_v1  ;;  %469 = vmatpush.msrb.mxu1 %v2651_v1 }
  0x52   : > { %361 = vmatpush.msra.mxu2 %v2651_v1 }
  0x53   : > { %426 = vmatpush.msrb.mxu0 %v2651_v1  ;;  %470 = vmatpush.msrb.mxu1 %v2651_v1 }
  0x54   : > { %362 = vmatpush.msra.mxu2 %v2651_v1 }
  0x55   : > { %427 = vmatpush.msrb.mxu0 %v2651_v1  ;;  %471 = vmatpush.msrb.mxu1 %v2651_v1 }
  0x56   : > { %363 = vmatpush.msra.mxu2 %v2651_v1 }
  0x57   : > { %428 = vmatpush.msrb.mxu0 %v2651_v1  ;;  %472 = vmatpush.msrb.mxu1 %v2651_v1 }
  0x58   : > { %364 = vmatpush.msra.mxu2 %v2651_v1 }
  0x59   : > { %429 = vmatpush.msrb.mxu0 %v2651_v1  ;;  %473 = vmatpush.msrb.mxu1 %v2651_v1 }
  0x5a   : > { %365 = vmatpush.msra.mxu2 %v2651_v1 }
  0x5b   : > { %430 = vmatpush.msrb.mxu0 %v2651_v1  ;;  %474 = vmatpush.msrb.mxu1 %v2651_v1 }
  0x5c   : > { %523 = vmatpush.msrb.mxu2 %v2652_v10 }
  0x5d   : > { %431 = vmatpush.msrb.mxu0 %v2651_v1  ;;  %475 = vmatpush.msrb.mxu1 %v2651_v1 }
  0x5f   : > { %432 = vmatpush.msrb.mxu0 %v2651_v1  ;;  %476 = vmatpush.msrb.mxu1 %v2651_v1 }
  0x61   : > { %433 = vmatpush.msrb.mxu0 %v2651_v1  ;;  %477 = vmatpush.msrb.mxu1 %v2651_v1 }
  0x63   : > { %551 = vmatpush.msra.mxu1 %v2651_v1  ;;  %544 = vmatpush.msra.mxu0 %v2652_v10 }
  0x65   : > { %552 = vmatpush.msra.mxu1 %v2651_v1 }
  0x67   : > { %553 = vmatpush.msra.mxu1 %v2651_v1 }
  0x69   : > { %554 = vmatpush.msra.mxu1 %v2651_v1 }
  0x6b   : > { %555 = vmatpush.msra.mxu1 %v2651_v1 }
  0x6d   : > { %556 = vmatpush.msra.mxu1 %v2651_v1 }
  0x6f   : > { %557 = vmatpush.msra.mxu1 %v2651_v1 }
  0x71   : > { %558 = vmatpush.msra.mxu1 %v2651_v1 }
  0x73   : > { %559 = vmatpush.msra.mxu1 %v2651_v1 }
  0x75   : > { %560 = vmatpush.msra.mxu1 %v2651_v1 }
  0x77   : > { %561 = vmatpush.msra.mxu1 %v2651_v1 }
  0x79   : > { %562 = vmatpush.msra.mxu1 %v2651_v1 }
  0x7b   : > { %563 = vmatpush.msra.mxu1 %v2651_v1 }
  0x7d   : > { %564 = vmatpush.msra.mxu1 %v2651_v1 }
  0x7f   : > { %565 = vmatpush.msra.mxu1 %v2651_v1 }
  0x81   : > { %566 = vmatpush.msra.mxu1 %v2651_v1 }
  0xb0   : > { %v303_v11 = vpop.permute.xlu0 %302 }
  0xbf   : > { %v328_v12 = vpop.f32.mrf.mxu0 }
  0xc0   : > { %v2886_v13 = vadd.f32 %v328_v12, %v303_v11 }
  0xc1   : > { %v341_v14 = vpop.f32.mrf.mxu1 }
  0xc2   : > { %v2888_v15 = vadd.f32 %v341_v14, %v303_v11  ;;  %v348_v16 = vand.u32 2147483647, %v2886_v13  ;;  %v1454_v48 = vsub.f32 %v2886_v13, %v346_v34 }
  0xc4   : > { %v349_v17 = vand.u32 2147483647, %v2888_v15  ;;  %v2892_v18 = vand.u32 4294901760, %v348_v16  ;;  %v1456_v49 = vmul.f32 %v1454_v48, %v1454_v48  ;;  %v1455_v53 = vsub.f32 %v2888_v15, %v347_v42 }
  0xc6   : > { %v2894_v19 = vand.u32 4294901760, %v349_v17  ;;  %v367_v21 = vsub.f32 %v348_v16, %v2892_v18  ;;  %392 = vmatmul.f32.vlgmr.msra.gmra.mxu3 %v2892_v18  ;;  %479 = vmatmul.f32.vlgmr.msrb.gmra.mxu1 %v2892_v18  ;;  %v3108_v50 = vand.u32 4294901760, %v1456_v49  ;;  %v1457_v54 = vmul.f32 %v1455_v53, %v1455_v53 }
  0xc7   : > { %v330_v22 = vpop.f32.mrf.mxu0  ;;  %456 = vmatpush.msra.mxu3 %v2652_v10 }
  0xc8   : > { %782 = vmatpush.msrb.mxu1 %v2894_v19  ;;  %v2903_v23 = vand.u32 4294901760, %v367_v21  ;;  %v2908_v26 = vsub.f32 %v349_v17, %v2894_v19  ;;  %v3120_v51 = vsub.f32 %v1456_v49, %v3108_v50  ;;  %v3147_v55 = vand.u32 4294901760, %v1457_v54 }
  0xc9   : > { %v343_v24 = vpop.f32.mrf.mxu1 }
  0xca   : > { %437 = vmatmul.f32.vlgmr.msrb.gmra.mxu0 %v2903_v23  ;;  %v369_v27 = vsub.f32 %v367_v21, %v2903_v23  ;;  %v2920_v30 = vand.u32 4294901760, %v2908_v26  ;;  %v2017_v52 = vand.u32 4294901760, %v3120_v51  ;;  %v3157_v56 = vsub.f32 %v1457_v54, %v3147_v55 }
  0xcb   : > { %595 = vmatpush.msrb.mxu0 %v2651_v1 }
  0xcc   : > { %v2913_v28 = vand.u32 4294901760, %v369_v27  ;;  %v502_v36 = vsub.f32 %v2908_v26, %v2920_v30  ;;  %v2163_v57 = vand.u32 4294901760, %v3157_v56  ;;  %v2018_v58 = vsub.f32 %v3120_v51, %v2017_v52 }
  0xcd   : > { %596 = vmatpush.msrb.mxu0 %v2651_v1 }
  0xce   : > { %371 = vmatmul.f32.vlgmr.msra.gmra.mxu2 %v2913_v28  ;;  %414 = vmatmul.f32.vlgmr.msrb.gmra.mxu3 %v367_v21  ;;  %v503_v38 = vand.u32 4294901760, %v502_v36  ;;  %v2164_v59 = vsub.f32 %v3157_v56, %v2163_v57  ;;  %v2019_v60 = vand.u32 4294901760, %v2018_v58 }
  0xcf   : > { %483 = vmatpush.msrb.mxu3 %v2651_v1  ;;  %570 = vmatmul.f32.vlgmr.msra.gmra.mxu1 %v2920_v30 }
  0xd0   : > { %597 = vmatpush.msrb.mxu0 %v2651_v1  ;;  %884 = vmatpush.msra.mxu1 %v2920_v30  ;;  %v2165_v61 = vand.u32 4294901760, %v2164_v59 }
  0xd1   : > { %484 = vmatpush.msrb.mxu3 %v2651_v1  ;;  %589 = vmatpush.msra.mxu2 %v2652_v10 }
  0xd2   : > { %598 = vmatpush.msrb.mxu0 %v2651_v1 }
  0xd3   : > { %485 = vmatpush.msrb.mxu3 %v2651_v1  ;;  %547 = vmatmul.f32.vlgmr.msra.gmra.mxu0 %v2908_v26 }
  0xd4   : > { %599 = vmatpush.msrb.mxu0 %v2651_v1 }
  0xd5   : > { %486 = vmatpush.msrb.mxu3 %v2651_v1 }
  0xd6   : > { %600 = vmatpush.msrb.mxu0 %v2651_v1  ;;  %458 = vmatmul.f32.vlgmr.msra.gmra.mxu3 %v2892_v18 }
  0xd7   : > { %487 = vmatpush.msrb.mxu3 %v2651_v1  ;;  %525 = vmatmul.f32.vlgmr.msrb.gmra.mxu2 %v2894_v19 }
  0xd8   : > { %601 = vmatpush.msrb.mxu0 %v2651_v1  ;;  %636 = vmatpush.msrb.mxu2 %v2892_v18 }
  0xd9   : > { %788 = vmatmul.f32.vlgmr.msrb.gmra.mxu1 %v2936_v32  ;;  %488 = vmatpush.msrb.mxu3 %v2651_v1 }
  0xda   : > { %602 = vmatpush.msrb.mxu0 %v2651_v1  ;;  %976 = vmatpush.msrb.mxu1 %v2652_v10 }
  0xdb   : > { %489 = vmatpush.msrb.mxu3 %v2651_v1 }
  0xdc   : > { %603 = vmatpush.msrb.mxu0 %v2651_v1 }
  0xdd   : > { %490 = vmatpush.msrb.mxu3 %v2651_v1 }
  0xde   : > { %604 = vmatpush.msrb.mxu0 %v2651_v1 }
  0xdf   : > { %491 = vmatpush.msrb.mxu3 %v2651_v1  ;;  %591 = vmatmul.f32.vlgmr.msra.gmra.mxu2 %v2894_v19 }
  0xe0   : > { %605 = vmatpush.msrb.mxu0 %v2651_v1  ;;  %689 = vmatpush.msra.mxu2 %v367_v21 }
  0xe1   : > { %2408 = vmatmul.msk.f32.vlgmr.msra.gmra.mxu1 %vm616_vm1, %v2651_v1  ;;  %492 = vmatpush.msrb.mxu3 %v2651_v1 }
  0xe2   : > { %1024 = vmatpush.msra.mxu1 %v2651_v1  ;;  %606 = vmatpush.msrb.mxu0 %v2651_v1 }
  0xe3   : > { %493 = vmatpush.msrb.mxu3 %v2651_v1 }
  0xe4   : > { %1025 = vmatpush.msra.mxu1 %v2651_v1  ;;  %607 = vmatpush.msrb.mxu0 %v2651_v1 }
  0xe5   : > { %494 = vmatpush.msrb.mxu3 %v2651_v1 }
  0xe6   : > { %1026 = vmatpush.msra.mxu1 %v2651_v1  ;;  %608 = vmatpush.msrb.mxu0 %v2651_v1 }
  0xe7   : > { %495 = vmatpush.msrb.mxu3 %v2651_v1  ;;  %642 = vmatmul.f32.vlgmr.msrb.gmra.mxu2 %v2936_v32 }
  0xe8   : > { %1027 = vmatpush.msra.mxu1 %v2651_v1  ;;  %609 = vmatpush.msrb.mxu0 %v2651_v1 }
  0xe9   : > { %738 = vmatpush.msrb.mxu2 %v2903_v23  ;;  %496 = vmatpush.msrb.mxu3 %v2651_v1 }
  0xea   : > { %1028 = vmatpush.msra.mxu1 %v2651_v1  ;;  %610 = vmatpush.msrb.mxu0 %v2651_v1 }
  0xeb   : > { %612 = vmatmul.f32.vlgmr.msrb.gmra.mxu0 %v2894_v19  ;;  %497 = vmatpush.msrb.mxu3 %v2651_v1 }
  0xec   : > { %1029 = vmatpush.msra.mxu1 %v2651_v1  ;;  %858 = vmatpush.msra.mxu0 %v2894_v19 }
  0xed   : > { %498 = vmatpush.msrb.mxu3 %v2651_v1  ;;  %978 = vmatmul.f32.vlgmr.msrb.gmra.mxu1 %v2985_v37 }
  0xee   : > { %1030 = vmatpush.msra.mxu1 %v2651_v1  ;;  %504 = vmatmul.f32.vlgmr.msrb.gmra.mxu3 %v503_v38 }
  0xef   : > { %666 = vmatpush.msra.mxu3 %v2913_v28  ;;  %692 = vmatmul.f32.vlgmr.msra.gmra.mxu2 %v2905_v25 }
  0xf0   : > { %1031 = vmatpush.msra.mxu1 %v2651_v1  ;;  %812 = vmatpush.msra.mxu2 %v503_v38 }
  0xf1   : > { %712 = vmatpush.msrb.mxu3 %v2892_v18  ;;  %956 = vmatpush.msrb.mxu0 %v2652_v10 }
  0xf2   : > { %1032 = vmatpush.msra.mxu1 %v2651_v1 }
  0xf3   : > { %862 = vmatmul.f32.vlgmr.msra.gmra.mxu0 %v2916_v29 }
  0xf4   : > { %1033 = vmatpush.msra.mxu1 %v2651_v1  ;;  %1019 = vmatpush.msra.mxu0 %v2652_v10 }
  0xf6   : > { %1034 = vmatpush.msra.mxu1 %v2651_v1  ;;  %2404 = vmatmul.msk.f32.vlgmr.msra.gmra.mxu3 %vm616_vm1, %v2651_v1 }
  0xf7   : > { %760 = vmatpush.msra.mxu3 %v2892_v18  ;;  %2405 = vmatmul.msk.f32.vlgmr.msrb.gmra.mxu2 %vm616_vm1, %v2651_v1 }
  0xf8   : > { %1035 = vmatpush.msra.mxu1 %v2651_v1  ;;  %906 = vmatpush.msrb.mxu2 %v2894_v19 }
  0xfa   : > { %1036 = vmatpush.msra.mxu1 %v2651_v1 }
  0xfb   : > { %957 = vmatmul.f32.vlgmr.msrb.gmra.mxu0 %v2970_v35 }
  0xfc   : > { %1037 = vmatpush.msra.mxu1 %v2651_v1  ;;  %1044 = vmatpush.msrb.mxu0 %v2651_v1 }
  0xfe   : > { %1038 = vmatpush.msra.mxu1 %v2651_v1  ;;  %1045 = vmatpush.msrb.mxu0 %v2651_v1 }
  0xff   : > { %716 = vmatmul.f32.vlgmr.msrb.gmra.mxu3 %v2916_v29  ;;  %2407 = vmatmul.msk.f32.vlgmr.msra.gmra.mxu2 %vm616_vm1, %v2651_v1 }
 0x100   : > { %1039 = vmatpush.msra.mxu1 %v2651_v1  ;;  %835 = vmatpush.msrb.mxu3 %v2908_v26 }
 0x101   : > { %1040 = vmatmul.f32.vlgmr.msra.gmra.mxu1 %v2970_v35  ;;  %1046 = vmatpush.msrb.mxu0 %v2651_v1 }
 0x102   : > { %982 = vmatpush.msra.mxu2 %v2651_v1  ;;  %1146 = vmatpush.msrb.mxu1 %v2652_v10 }
 0x103   : > { %1047 = vmatpush.msrb.mxu0 %v2651_v1 }
 0x104   : > { %1215 = vmatpush.msra.mxu1 %v3027_v41  ;;  %983 = vmatpush.msra.mxu2 %v2651_v1 }
 0x105   : > { %1020 = vmatmul.f32.vlgmr.msra.gmra.mxu0 %v2970_v35 }
 0x106   : > { %1048 = vmatpush.msrb.mxu0 %v2651_v1  ;;  %984 = vmatpush.msra.mxu2 %v2651_v1 }
 0x107   : > { %2406 = vmatmul.msk.f32.vlgmr.msra.gmra.mxu3 %vm616_vm1, %v2651_v1  ;;  %2409 = vmatmul.msk.f32.vlgmr.msrb.gmra.mxu2 %vm616_vm1, %v2651_v1 }
 0x108   : > { %1049 = vmatpush.msrb.mxu0 %v2651_v1  ;;  %985 = vmatpush.msra.mxu2 %v2651_v1 }
 0x109   : > { %917 = vmatpush.msra.mxu3 %v2651_v1  ;;  %1147 = vmatmul.f32.vlgmr.msrb.gmra.mxu1 %v3042_v43 }
 0x10a   : > { %1050 = vmatpush.msrb.mxu0 %v2651_v1  ;;  %986 = vmatpush.msra.mxu2 %v2651_v1 }
 0x10b   : > { %918 = vmatpush.msra.mxu3 %v2651_v1  ;;  %1259 = vmatpush.msrb.mxu1 %v2970_v35 }
 0x10c   : > { %1051 = vmatpush.msrb.mxu0 %v2651_v1  ;;  %987 = vmatpush.msra.mxu2 %v2651_v1 }
 0x10d   : > { %919 = vmatpush.msra.mxu3 %v2651_v1 }
 0x10e   : > { %1052 = vmatpush.msrb.mxu0 %v2651_v1  ;;  %988 = vmatpush.msra.mxu2 %v2651_v1 }
 0x10f   : > { %920 = vmatpush.msra.mxu3 %v2651_v1 }
 0x110   : > { %1053 = vmatpush.msrb.mxu0 %v2651_v1  ;;  %838 = vmatmul.f32.vlgmr.msrb.gmra.mxu3 %v2905_v25 }
 0x111   : > { %989 = vmatpush.msra.mxu2 %v2651_v1  ;;  %921 = vmatpush.msra.mxu3 %v2651_v1 }
 0x112   : > { %1054 = vmatpush.msrb.mxu0 %v2651_v1  ;;  %2410 = vmatmul.msk.f32.vlgmr.msra.gmra.mxu1 %vm616_vm1, %v2651_v1 }
 0x113   : > { %990 = vmatpush.msra.mxu2 %v2651_v1  ;;  %922 = vmatpush.msra.mxu3 %v2651_v1 }
 0x114   : > { %1055 = vmatpush.msrb.mxu0 %v2651_v1  ;;  %1305 = vmatpush.msra.mxu1 %v2970_v35 }
 0x115   : > { %991 = vmatpush.msra.mxu2 %v2651_v1  ;;  %923 = vmatpush.msra.mxu3 %v2651_v1 }
 0x116   : > { %1056 = vmatpush.msrb.mxu0 %v2651_v1 }
 0x117   : > { %992 = vmatpush.msra.mxu2 %v2651_v1  ;;  %924 = vmatpush.msra.mxu3 %v2651_v1 }
 0x118   : > { %1057 = vmatpush.msrb.mxu0 %v2651_v1 }
 0x119   : > { %993 = vmatpush.msra.mxu2 %v2651_v1  ;;  %925 = vmatpush.msra.mxu3 %v2651_v1 }
 0x11a   : > { %1058 = vmatpush.msrb.mxu0 %v2651_v1  ;;  %1263 = vmatmul.f32.vlgmr.msrb.gmra.mxu1 %v2916_v29 }
 0x11b   : > { %994 = vmatpush.msra.mxu2 %v2651_v1  ;;  %926 = vmatpush.msra.mxu3 %v2651_v1 }
 0x11c   : > { %1059 = vmatpush.msrb.mxu0 %v2651_v1  ;;  %1377 = vmatpush.msrb.mxu1 %v3062_v44 }
 0x11d   : > { %995 = vmatpush.msra.mxu2 %v2651_v1  ;;  %1064 = vmatmul.f32.vlgmr.msrb.gmra.mxu0 %v1063_v47 }
 0x11e   : > { %927 = vmatpush.msra.mxu3 %v2651_v1  ;;  %1186 = vmatpush.msra.mxu0 %v2970_v35 }
 0x11f   : > { %996 = vmatpush.msra.mxu2 %v2651_v1 }
 0x120   : > { %1237 = vmatpush.msrb.mxu0 %v2985_v37  ;;  %928 = vmatpush.msra.mxu3 %v2651_v1 }
 0x121   : > { %997 = vmatpush.msra.mxu2 %v2651_v1 }
 0x122   : > { %929 = vmatpush.msra.mxu3 %v2651_v1  ;;  %2412 = vmatmul.msk.f32.vlgmr.msra.gmra.mxu1 %vm616_vm1, %v2651_v1 }
 0x123   : > { %1103 = vmatpush.msrb.mxu2 %v2652_v10  ;;  %1990 = vmatpush.msra.mxu1 %v3108_v50 }
 0x124   : > { %1000 = vmatmul.f32.vlgmr.msra.gmra.mxu2 %v3012_v39  ;;  %930 = vmatpush.msra.mxu3 %v2651_v1 }
 0x125   : > { %1151 = vmatpush.msra.mxu2 %v2651_v1  ;;  %1192 = vmatmul.f32.vlgmr.msra.gmra.mxu0 %v2936_v32 }
 0x126   : > { %1284 = vmatpush.msra.mxu0 %v3012_v39  ;;  %931 = vmatpush.msra.mxu3 %v2651_v1 }
 0x127   : > { %1152 = vmatpush.msra.mxu2 %v2651_v1 }
 0x128   : > { %932 = vmatpush.msra.mxu3 %v2651_v1 }
 0x129   : > { %1153 = vmatpush.msra.mxu2 %v2651_v1  ;;  %937 = vmatmul.f32.vlgmr.msra.gmra.mxu3 %v3027_v41 }
 0x12a   : > { %1083 = vmatpush.msrb.mxu3 %v2652_v10  ;;  %1380 = vmatmul.f32.vlgmr.msrb.gmra.mxu1 %v2905_v25 }
 0x12b   : > { %1154 = vmatpush.msra.mxu2 %v2651_v1  ;;  %2092 = vmatpush.msrb.mxu1 %v2017_v52 }
 0x12c   : > { %1109 = vmatpush.msra.mxu3 %v2651_v1  ;;  %1105 = vmatmul.f32.vlgmr.msrb.gmra.mxu2 %v3062_v44 }
 0x12d   : > { %1155 = vmatpush.msra.mxu2 %v2651_v1  ;;  %1240 = vmatmul.f32.vlgmr.msrb.gmra.mxu0 %v2905_v25 }
 0x12e   : > { %1110 = vmatpush.msra.mxu3 %v2651_v1  ;;  %1355 = vmatpush.msrb.mxu0 %v1063_v47 }
 0x12f   : > { %1156 = vmatpush.msra.mxu2 %v2651_v1 }
 0x130   : > { %1111 = vmatpush.msra.mxu3 %v2651_v1 }
 0x131   : > { %1157 = vmatpush.msra.mxu2 %v2651_v1  ;;  %1084 = vmatmul.f32.vlgmr.msrb.gmra.mxu3 %v3042_v43 }
 0x132   : > { %1112 = vmatpush.msra.mxu3 %v2651_v1 }
 0x133   : > { %1158 = vmatpush.msra.mxu2 %v2651_v1 }
 0x134   : > { %1113 = vmatpush.msra.mxu3 %v2651_v1 }
 0x135   : > { %1159 = vmatpush.msra.mxu2 %v2651_v1  ;;  %2411 = vmatmul.msk.f32.vlgmr.msra.gmra.mxu0 %vm616_vm1, %v2651_v1 }
 0x136   : > { %1114 = vmatpush.msra.mxu3 %v2651_v1  ;;  %1445 = vmatpush.msra.mxu0 %v3042_v43 }
 0x137   : > { %1160 = vmatpush.msra.mxu2 %v2651_v1 }
 0x138   : > { %1115 = vmatpush.msra.mxu3 %v2651_v1 }
 0x139   : > { %1161 = vmatpush.msra.mxu2 %v2651_v1 }
 0x13a   : > { %1116 = vmatpush.msra.mxu3 %v2651_v1 }
 0x13b   : > { %1162 = vmatpush.msra.mxu2 %v2651_v1 }
 0x13c   : > { %1117 = vmatpush.msra.mxu3 %v2651_v1 }
 0x13d   : > { %1163 = vmatpush.msra.mxu2 %v2651_v1  ;;  %2413 = vmatmul.msk.f32.vlgmr.msrb.gmra.mxu0 %vm616_vm1, %v2651_v1 }
 0x13e   : > { %1118 = vmatpush.msra.mxu3 %v2651_v1  ;;  %2066 = vmatpush.msrb.mxu0 %v3108_v50 }
 0x13f   : > { %1164 = vmatpush.msra.mxu2 %v2651_v1 }
 0x140   : > { %1119 = vmatpush.msra.mxu3 %v2651_v1 }
 0x141   : > { %1165 = vmatpush.msra.mxu2 %v2651_v1 }
 0x142   : > { %1120 = vmatpush.msra.mxu3 %v2651_v1 }
 0x143   : > { %1166 = vmatpush.msra.mxu2 %v2651_v1  ;;  %v480_v6 = vpop.f32.mrf.mxu1 }
 0x144   : > { %1121 = vmatpush.msra.mxu3 %v2651_v1  ;;  %1167 = vmatmul.f32.vlgmr.msra.gmra.mxu2 %v3042_v43 }
 0x145   : > { %1399 = vmatpush.msrb.mxu2 %v3042_v43  ;;  %2415 = vmatmul.msk.f32.vlgmr.msra.gmra.mxu0 %vm616_vm1, %v2651_v1 }
 0x146   : > { %1122 = vmatpush.msra.mxu3 %v2651_v1  ;;  %2166 = vmatpush.msra.mxu0 %v2165_v61 }
 0x147   : > { %2020 = vmatpush.msra.mxu2 %v2019_v60  ;;  %v438_v4 = vpop.f32.mrf.mxu0 }
 0x148   : > { %1123 = vmatpush.msra.mxu3 %v2651_v1 }
 0x149   : > { %v393_v62 = vpop.f32.mrf.mxu3 }
 0x14a   : > { %1124 = vmatpush.msra.mxu3 %v2651_v1 }
 0x14b   : > { %1127 = vmatmul.f32.vlgmr.msra.gmra.mxu3 %v3073_v45 }
 0x14c   : > { %1326 = vmatpush.msrb.mxu3 %v3042_v43  ;;  %1403 = vmatmul.f32.vlgmr.msrb.gmra.mxu2 %v2916_v29  ;;  %v571_v11 = vpop.f32.mrf.mxu1 }
 0x14d   : > { %2114 = vmatpush.msrb.mxu2 %v3108_v50 }
 0x14e   : > { %1424 = vmatpush.msra.mxu3 %v3073_v45 }
 0x150   : > { %v548_v13 = vpop.f32.mrf.mxu0 }
 0x151   : > { %v372_v63 = vpop.f32.mrf.mxu2  ;;  %v415_v0 = vpop.f32.mrf.mxu3 }
 0x152   : > { %v394_v2 = vadd.f32 %v393_v62, %v372_v63 }
 0x153   : > { %1332 = vmatmul.f32.vlgmr.msrb.gmra.mxu3 %v2936_v32 }
 0x154   : > { %2043 = vmatpush.msrb.mxu3 %v3120_v51  ;;  %v416_v3 = vadd.f32 %v415_v0, %v394_v2 }
 0x156   : > { %v439_v5 = vadd.f32 %v438_v4, %v416_v3  ;;  %v789_v14 = vpop.f32.mrf.mxu1 }
 0x159   : > { %v459_v7 = vpop.f32.mrf.mxu3 }
 0x15a   : > { %v460_v8 = vadd.f32 %v459_v7, %v439_v5  ;;  %v526_v10 = vpop.f32.mrf.mxu2 }
 0x15b   : > { %2414 = vmatmul.msk.f32.vlgmr.msra.gmra.mxu3 %vm616_vm1, %v2651_v1 }
 0x15c   : > { %2136 = vmatpush.msra.mxu3 %v3147_v55  ;;  %v481_v9 = vadd.f32 %v480_v6, %v460_v8 }
 0x15e   : > { %v887_v20 = vpop.f32.mrf.mxu1 }
 0x162   : > { %v592_v12 = vpop.f32.mrf.mxu2 }
 0x168   : > { %v613_v18 = vpop.f32.mrf.mxu0 }
 0x16a   : > { %v643_v15 = vpop.f32.mrf.mxu2  ;;  %v979_v28 = vpop.f32.mrf.mxu1 }
 0x170   : > { %v863_v25 = vpop.f32.mrf.mxu0 }
 0x171   : > { %v505_v16 = vpop.f32.mrf.mxu3 }
 0x172   : > { %v506_v17 = vadd.f32 %v505_v16, %v481_v9  ;;  %v693_v1 = vpop.f32.mrf.mxu2 }
 0x174   : > { %v527_v19 = vadd.f32 %v526_v10, %v506_v17 }
 0x176   : > { %v549_v21 = vadd.f32 %v548_v13, %v527_v19 }
 0x178   : > { %v572_v22 = vadd.f32 %v571_v11, %v549_v21  ;;  %v958_v33 = vpop.f32.mrf.mxu0 }
 0x179   : > { %v669_v23 = vpop.f32.mrf.mxu3 }
 0x17a   : > { %v593_v24 = vadd.f32 %v592_v12, %v572_v22  ;;  %v670_v27 = vadd.f32 %v669_v23, %v643_v15  ;;  %v741_v31 = vpop.f32.mrf.mxu2 }
 0x17c   : > { %v614_v26 = vadd.f32 %v613_v18, %v593_v24  ;;  %v694_v30 = vadd.f32 %v693_v1, %v670_v27 }
 0x17e   : > { %v3196_v35 = vpop.f32.mrf.mxu1  ;;  %v912_v52 = vmul.f32 0.00390625, %v614_v26 }
 0x180   : > { %v1458_v54 = vmul.f32 2.0, %v912_v52 }
 0x182   : > { %v717_v29 = vpop.f32.mrf.mxu3  ;;  %v815_v39 = vpop.f32.mrf.mxu2  ;;  %v1460_v59 = vsel %vm1459_vm2, %v1458_v54, -inf }
 0x183   : > { %v718_v32 = vadd.f32 %v717_v29, %v694_v30  ;;  %v1021_v40 = vpop.f32.mrf.mxu0  ;;  %v816_v41 = vadd.f32 %v815_v39, %v789_v14  ;;  %v1461_v62 = vrot.slane %v1460_v59, 4 }
 0x185   : > { %v742_v34 = vadd.f32 %v741_v31, %v718_v32  ;;  %v1462_v2 = vmax.f32 %v1460_v59, %v1461_v62 }
 0x186   : > { %v3206_v44 = vpop.f32.mrf.mxu1 }
 0x187   : > { %v1463_v7 = vrot.slane %v1462_v2, 2 }
 0x189   : > { %v1464_v12 = vmax.f32 %v1462_v2, %v1463_v7 }
 0x18a   : > { %v763_v36 = vpop.f32.mrf.mxu3  ;;  %v909_v46 = vpop.f32.mrf.mxu2 }
 0x18b   : > { %v764_v37 = vadd.f32 %v763_v36, %v742_v34  ;;  %v1465_v15 = vrot.slane %v1464_v12, 1 }
 0x18d   : > { %v3198_v38 = vmul.f32 0.125, %v764_v37  ;;  %v1466_v17 = vmax.f32 %v1464_v12, %v1465_v15 }
 0x18f   : > { %1598 = vrot.lane.b32.xlu1 %v3198_v38, %s2653_s24  ;;  %1554 = vrot.lane.b32.xlu2 %v3198_v38, %s2654_s26  ;;  %v1218_v51 = vpop.f32.mrf.mxu1  ;;  %v1467_v19 = vsub.f32 %v1458_v54, %v1466_v17 }
 0x190   : > { %1531 = vrot.lane.b32.xlu0 %v3198_v38, %s2655_s27 }
 0x191   : > { %v1468_v22 = vmul.f32 1.442695, %v1467_v19 }
 0x193   : > { %v839_v42 = vpop.f32.mrf.mxu3  ;;  %2497 = vpow2.f32 %v1468_v22 }
 0x194   : > { %v840_v43 = vadd.f32 %v839_v42, %v816_v41 }
 0x196   : > { %v864_v45 = vadd.f32 %v863_v25, %v840_v43 }
 0x197   : > { %1620 = vrot.lane.b32.xlu2 %v3198_v38, %s2656_s28  ;;  %v1264_v60 = vpop.f32.mrf.mxu1 }
 0x198   : > { %v888_v47 = vadd.f32 %v887_v20, %v864_v45  ;;  %1576 = vrot.lane.b32.xlu0 %v3198_v38, %s2657_s6 }
 0x199   : > { %v3244_v27 = vpop.eup %2497 }
 0x19a   : > { %v910_v48 = vadd.f32 %v909_v46, %v888_v47  ;;  %v1065_v49 = vpop.f32.mrf.mxu0  ;;  %v1470_v31 = vsel %vm1459_vm2, %v3244_v27, 0.0 }
 0x19b   : > { %v1471_v36 = vrot.slane %v1470_v31, 4 }
 0x19c   : > { %v3212_v50 = vmul.f32 0.125, %v910_v48 }
 0x19d   : > { %v1472_v45 = vadd.f32 %v1471_v36, %v1470_v31 }
 0x19e   : > { %1533 = vrot.lane.b32.xlu1 %v3212_v50, %s2655_s27 }
 0x19f   : > { %1600 = vrot.lane.b32.xlu2 %v3212_v50, %s2653_s24  ;;  %v1308_v6 = vpop.f32.mrf.mxu1 }
 0x1a0   : > { %1642 = vrot.lane.b32.xlu0 %v3198_v38, %s2658_s21 }
 0x1a2   : > { %v1193_v53 = vpop.f32.mrf.mxu0 }
 0x1a3   : > { %v1219_v58 = vadd.f32 %v1218_v51, %v1193_v53  ;;  %v1473_v51 = vrot.slane %v1472_v45, 2 }
 0x1a5   : > { %v1474_v59 = vadd.f32 %v1473_v51, %v1472_v45 }
 0x1a6   : > { %1578 = vrot.lane.b32.xlu1 %v3212_v50, %s2657_s6 }
 0x1a7   : > { %v1001_v11 = vpop.f32.mrf.mxu2 }
 0x1a8   : > { %1556 = vrot.lane.b32.xlu0 %v3212_v50, %s2654_s26 }
 0x1aa   : > { %v1241_v61 = vpop.f32.mrf.mxu0 }
 0x1ab   : > { %v1242_v63 = vadd.f32 %v1241_v61, %v1219_v58 }
 0x1ac   : > { %v938_v0 = vpop.f32.mrf.mxu3 }
 0x1ad   : > { %v1265_v3 = vadd.f32 %v1264_v60, %v1242_v63  ;;  %v959_v4 = vadd.f32 %v958_v33, %v938_v0  ;;  %v1475_v63 = vrot.slane %v1474_v59, 1 }
 0x1ae   : > { %1644 = vrot.lane.b32.xlu1 %v3212_v50, %s2658_s21 }
 0x1af   : > { %v980_v9 = vadd.f32 %v979_v28, %v959_v4  ;;  %v1106_v23 = vpop.f32.mrf.mxu2  ;;  %v1476_v2 = vadd.f32 %v1475_v63, %v1474_v59  ;;  %v3311_v59 = vld [vmem:[#allocation2 + $0x3] ss:$8 sm:$0x3] }
 0x1b0   : > { %1622 = vrot.lane.b32.xlu0 %v3212_v50, %s2656_s28 }
 0x1b1   : > { %v1002_v14 = vadd.f32 %v1001_v11, %v980_v9  ;;  %v1488_v19 = vand.u32 2147483648, %v1476_v2  ;;  %vm1482_vm4 = vweird.f32 %v1476_v2 }
 0x1b2   : > { %v1287_v5 = vpop.f32.mrf.mxu0 }
 0x1b3   : > { %v1288_v8 = vadd.f32 %v1287_v5, %v1265_v3  ;;  %v1022_v16 = vadd.f32 %v1021_v40, %v1002_v14 }
 0x1b4   : > { %v1085_v21 = vpop.f32.mrf.mxu3 }
 0x1b5   : > { %v1309_v10 = vadd.f32 %v1308_v6, %v1288_v8  ;;  %v1042_v18 = vadd.f32 %v3196_v35, %v1022_v16  ;;  %v1381_v35 = vpop.f32.mrf.mxu1 }
 0x1b7   : > { %v3229_v13 = vmul.f32 0.125, %v1309_v10  ;;  %v1066_v20 = vadd.f32 %v1065_v49, %v1042_v18 }
 0x1b9   : > { %1755 = vrot.lane.b32.xlu1 %v3229_v13, %s2655_s27  ;;  %1783 = vrot.lane.b32.xlu2 %v3229_v13, %s2657_s6  ;;  %v1086_v24 = vadd.f32 %v1085_v21, %v1066_v20  ;;  %v1486_v21 = vand.u32 2147483647, %v1476_v2 }
 0x1ba   : > { %1797 = vrot.lane.b32.xlu0 %v3229_v13, %s2653_s24  ;;  %v1358_v32 = vpop.f32.mrf.mxu0 }
 0x1bb   : > { %v1107_v1 = vadd.f32 %v1106_v23, %v1086_v24  ;;  %vm1487_vm7 = vcmp.eq.f32.partialorder %v1486_v21, 8.507059e+37 }
 0x1c1   : > { %1769 = vrot.lane.b32.xlu1 %v3229_v13, %s2654_s26  ;;  %1825 = vrot.lane.b32.xlu2 %v3229_v13, %s2658_s21 }
 0x1c2   : > { %v1448_v49 = vpop.f32.mrf.mxu0 }
 0x1c7   : > { %v1168_v28 = vpop.f32.mrf.mxu2 }
 0x1c9   : > { %1811 = vrot.lane.b32.xlu1 %v3229_v13, %s2656_s28 }
 0x1ce   : > { %v1128_v25 = vpop.f32.mrf.mxu3 }
 0x1cf   : > { %v1129_v26 = vadd.f32 %v1128_v25, %v1107_v1  ;;  %v1404_v43 = vpop.f32.mrf.mxu2 }
 0x1d1   : > { %v1149_v29 = vadd.f32 %v3206_v44, %v1129_v26  ;;  %v1489_v26 = vor.u32 1.1754944e-38, %v1488_v19 }
 0x1d3   : > { %v1169_v30 = vadd.f32 %v1168_v28, %v1149_v29 }
 0x1d5   : > { %v1451_v33 = vmul.f32 0.00390625, %v1169_v30  ;;  %v1535_v30 = vlaneseq }
 0x1d6   : > { %v1333_v34 = vpop.f32.mrf.mxu3 }
 0x1d7   : > { %v1494_v37 = vmul.f32 2.0, %v1451_v33  ;;  %v1359_v39 = vadd.f32 %v1358_v32, %v1333_v34 }
 0x1d9   : > { %v1495_v40 = vsel %vm1459_vm2, %v1494_v37, -inf  ;;  %v1382_v41 = vadd.f32 %v1381_v35, %v1359_v39 }
 0x1da   : > { %v1496_v42 = vrot.slane %v1495_v40, 4 }
 0x1db   : > { %v1405_v47 = vadd.f32 %v1404_v43, %v1382_v41 }
 0x1dc   : > { %v1497_v46 = vmax.f32 %v1495_v40, %v1496_v42  ;;  %v3279_v40 = vld [vmem:[#allocation2] ss:$8 sm:$0x3] }
 0x1de   : > { %v1498_v44 = vrot.slane %v1497_v46, 2  ;;  %v1427_v48 = vpop.f32.mrf.mxu3 }
 0x1df   : > { %v1428_v52 = vadd.f32 %v1427_v48, %v1405_v47  ;;  %v1542_v47 = vperm.slane %v3279_v40, 0 }
 0x1e0   : > { %v1499_v53 = vmax.f32 %v1497_v46, %v1498_v44  ;;  %v1543_v44 = vperm.slane %v3279_v40, 1 }
 0x1e1   : > { %v1449_v54 = vadd.f32 %v1448_v49, %v1428_v52 }
 0x1e2   : > { %v1500_v58 = vrot.slane %v1499_v53, 1 }
 0x1e3   : > { %v3250_v60 = vmul.f32 0.125, %v1449_v54 }
 0x1e4   : > { %v1501_v61 = vmax.f32 %v1499_v53, %v1500_v58  ;;  %v3307_v58 = vld [vmem:[#allocation2 + $0x1] ss:$8 sm:$0x3] }
 0x1e5   : > { %1799 = vrot.lane.b32.xlu1 %v3250_v60, %s2653_s24  ;;  %1757 = vrot.lane.b32.xlu2 %v3250_v60, %s2655_s27 }
 0x1e6   : > { %v1502_v62 = vsub.f32 %v1494_v37, %v1501_v61  ;;  %1785 = vrot.lane.b32.xlu0 %v3250_v60, %s2657_s6  ;;  %v3275_v37 = vand.u32 127, %v1535_v30  ;;  %v1530_v61 = vmul.f32 %v3212_v50, %v3212_v50 }
 0x1e8   : > { %v1503_v0 = vmul.f32 1.442695, %v1502_v62  ;;  %vm1537_vm11 = vcmp.lt.s32.totalorder %v3275_v37, 17  ;;  %vm1580_vm12 = vcmp.lt.s32.totalorder %v3275_v37, 15  ;;  %vm1602_vm13 = vcmp.lt.s32.totalorder %v3275_v37, 1 }
 0x1e9   : > { %v3269_v22 = vpop.permute.xlu2 %1554  ;;  %v1529_v62 = vmul.f32 %v3198_v38, %v3198_v38  ;;  %vm1558_vm14 = vcmp.lt.s32.totalorder %v3275_v37, 16  ;;  %vm1624_vm15 = vcmp.lt.s32.totalorder %v3275_v37, 127  ;;  %vm1646_vm0 = vcmp.lt.s32.totalorder %v3275_v37, 113 }
 0x1ea   : > { %2499 = vpow2.f32 %v1503_v0 }
 0x1eb   : > { %2501 = vrcp.f32 %v1476_v2 }
 0x1ed   : > { %1771 = vrot.lane.b32.xlu2 %v3250_v60, %s2654_s26 }
 0x1ee   : > { %1827 = vrot.lane.b32.xlu0 %v3250_v60, %s2658_s21 }
 0x1f0   : > { %v2500_v3 = vpop.eup %2499 }
 0x1f1   : > { %v1505_v4 = vsel %vm1459_vm2, %v2500_v3, 0.0  ;;  %v2502_v6 = vpop.eup %2501  ;;  %v3281_v42 = vpop.permute.xlu2 %1620 }
 0x1f2   : > { %v1506_v5 = vrot.slane %v1505_v4, 4  ;;  %v1478_v9 = vmul.f32 %v2502_v6, %v1476_v2  ;;  %vm1483_vm3 = vweird.f32 %v2502_v6 }
 0x1f3   : > { %vm1484_vm5 = vmor %vm1482_vm4, %vm1483_vm3  ;;  %vm1668_vm3 = vcmp.lt.s32.totalorder %v3275_v37, 112  ;;  %vm1690_vm4 = vcmp.lt.s32.totalorder %v3275_v37, 111 }
 0x1f4   : > { %v1507_v7 = vadd.f32 %v1506_v5, %v1505_v4  ;;  %v1479_v12 = vsub.f32 1.0, %v1478_v9  ;;  %v1565_v4 = vperm.slane %v3307_v58, 1 }
 0x1f5   : > { %1813 = vrot.lane.b32.xlu2 %v3250_v60, %s2656_s28 }
 0x1f6   : > { %v1508_v8 = vrot.slane %v1507_v7, 2  ;;  %1666 = vrot.lane.b32.xlu0 %v3212_v50, %s2659_s7  ;;  %v1480_v15 = vmul.f32 %v2502_v6, %v1479_v12 }
 0x1f8   : > { %v1509_v10 = vadd.f32 %v1508_v8, %v1507_v7  ;;  %v1481_v17 = vadd.f32 %v2502_v6, %v1480_v15 }
 0x1f9   : > { %v1601_v5 = vpop.permute.xlu2 %1600 }
 0x1fa   : > { %v1510_v11 = vrot.slane %v1509_v10, 1  ;;  %v1485_v24 = vsel %vm1484_vm5, %v2502_v6, %v1481_v17  ;;  %vm1718_vm5 = vcmask 1040384  }
 0x1fb   : > { %v1490_v31 = vsel %vm1487_vm7, %v1489_v26, %v1485_v24 }
 0x1fc   : > { %v1511_v14 = vadd.f32 %v1510_v11, %v1509_v10  ;;  %v1492_v36 = vmul.f32 8.0, %v1490_v31  ;;  %v1608_v10 = vperm.slane %v3311_v59, 0  ;;  %v1609_v11 = vperm.slane %v3311_v59, 1 }
 0x1fd   : > { %1664 = vrot.lane.b32.xlu2 %v3198_v38, %s2659_s7 }
 0x1fe   : > { %2503 = vrcp.f32 %v1511_v14  ;;  %1841 = vrot.lane.b32.xlu0 %v3250_v60, %s2659_s7  ;;  %v1523_v25 = vand.u32 2147483648, %v1511_v14  ;;  %v1521_v29 = vand.u32 2147483647, %v1511_v14  ;;  %vm1517_vm8 = vweird.f32 %v1511_v14 }
 0x1ff   : > { %v3287_v46 = vmul.f32 %v3244_v27, %v1492_v36  ;;  %v3301_v27 = vld [vmem:[#allocation2 + $0x2] ss:$8 sm:$0x3] }
 0x200   : > { %v1524_v34 = vor.u32 1.1754944e-38, %v1523_v25  ;;  %vm1522_vm10 = vcmp.eq.f32.partialorder %v1521_v29, 8.507059e+37  ;;  %v1586_v63 = vperm.slane %v3301_v27, 0  ;;  %v1587_v2 = vperm.slane %v3301_v27, 1 }
 0x201   : > { %v1599_v1 = vpop.permute.xlu1 %1598  ;;  %v3349_v29 = vld [vmem:[#allocation2 + $0x4] ss:$8 sm:$0x3] }
 0x202   : > { %v1532_v16 = vpop.permute.xlu0 %1531  ;;  %v1603_v12 = vsel %vm1602_vm13, %v1599_v1, %v1601_v5 }
 0x203   : > { %v1613_v30 = vmul.f32 %v1609_v11, %v1603_v12 }
 0x204   : > { %v2504_v18 = vpop.eup %2503 }
 0x205   : > { %1839 = vrot.lane.b32.xlu2 %v3229_v13, %s2659_s7  ;;  %v1513_v20 = vmul.f32 %v2504_v18, %v1511_v14  ;;  %vm1518_vm6 = vweird.f32 %v2504_v18  ;;  %v1604_v14 = vsel %vm1602_vm13, %v1601_v5, %v1599_v1 }
 0x206   : > { %1688 = vrot.lane.b32.xlu0 %v3212_v50, %s2660_s10  ;;  %vm1519_vm9 = vmor %vm1517_vm8, %vm1518_vm6 }
 0x207   : > { %v1514_v23 = vsub.f32 1.0, %v1513_v20 }
 0x209   : > { %v1515_v28 = vmul.f32 %v2504_v18, %v1514_v23 }
 0x20a   : > { %v1577_v32 = vpop.permute.xlu0 %1576 }
 0x20b   : > { %v1516_v33 = vadd.f32 %v2504_v18, %v1515_v28 }
 0x20d   : > { %1686 = vrot.lane.b32.xlu2 %v3198_v38, %s2660_s10  ;;  %v1520_v35 = vsel %vm1519_vm9, %v2504_v18, %v1516_v33 }
 0x20e   : > { %1855 = vrot.lane.b32.xlu0 %v3250_v60, %s2660_s10  ;;  %v1525_v39 = vsel %vm1522_vm10, %v1524_v34, %v1520_v35 }
 0x20f   : > { %v1527_v41 = vmul.f32 8.0, %v1525_v39  ;;  %v1630_v39 = vperm.slane %v3349_v29, 0 }
 0x210   : > { %v1534_v43 = vpop.permute.xlu1 %1533 }
 0x211   : > { %v3284_v45 = vmul.f32 %v2500_v3, %v1527_v41  ;;  %v1538_v48 = vsel %vm1537_vm11, %v1532_v16, %v1534_v43  ;;  %v1539_v49 = vsel %vm1537_vm11, %v1534_v43, %v1532_v16  ;;  %v1564_v3 = vperm.slane %v3307_v58, 0 }
 0x212   : > { %v3295_v51 = vpop.permute.xlu0 %1642  ;;  %v1546_v53 = vmul.f32 %v1542_v47, %v1539_v49  ;;  %v1547_v54 = vmul.f32 %v1543_v44, %v1538_v48  ;;  %v1631_v41 = vperm.slane %v3349_v29, 1 }
 0x213   : > { %v1911_v52 = vsub.f32 %v3287_v46, %v3284_v45 }
 0x214   : > { %v1550_v6 = vmul.f32 %v1546_v53, %v1546_v53  ;;  %v1551_v7 = vmul.f32 %v1547_v54, %v1547_v54  ;;  %v1548_v16 = vadd.f32 %v1546_v53, %v3198_v38  ;;  %v1549_v17 = vadd.f32 %v1547_v54, %v3212_v50 }
 0x215   : > { %1853 = vrot.lane.b32.xlu2 %v3229_v13, %s2660_s10 }
 0x216   : > { %v1552_v50 = vadd.f32 %v1550_v6, %v1529_v62  ;;  %v1553_v24 = vadd.f32 %v1551_v7, %v1530_v61  ;;  %v1617_v62 = vmul.f32 %v1613_v30, %v1613_v30 }
 0x218   : > { %v1579_v0 = vpop.permute.xlu1 %1578 }
 0x219   : > { %v1581_v8 = vsel %vm1580_vm12, %v1577_v32, %v1579_v0  ;;  %v1582_v9 = vsel %vm1580_vm12, %v1579_v0, %v1577_v32 }
 0x21a   : > { %1939 = vxpose.xlu1.b32.start.end [1/1] (short) (narrow) %v3284_v45, 8  ;;  %v1557_v15 = vpop.permute.xlu0 %1556  ;;  %v1590_v20 = vmul.f32 %v1586_v63, %v1582_v9  ;;  %v1591_v21 = vmul.f32 %v1587_v2, %v1581_v8 }
 0x21b   : > { %v1559_v18 = vsel %vm1558_vm14, %v3269_v22, %v1557_v15  ;;  %v1560_v19 = vsel %vm1558_vm14, %v1557_v15, %v3269_v22  ;;  %v1612_v22 = vmul.f32 %v1608_v10, %v1604_v14 }
 0x21c   : > { %v1568_v23 = vmul.f32 %v1564_v3, %v1560_v19  ;;  %v1569_v38 = vmul.f32 %v1565_v4, %v1559_v18  ;;  %v1594_v31 = vmul.f32 %v1590_v20, %v1590_v20  ;;  %v1595_v32 = vmul.f32 %v1591_v21, %v1591_v21 }
 0x21d   : > { %v1616_v61 = vmul.f32 %v1612_v22, %v1612_v22 }
 0x21e   : > { %v1570_v1 = vadd.f32 %v1568_v23, %v1548_v16  ;;  %v1571_v25 = vadd.f32 %v1569_v38, %v1549_v17  ;;  %v1572_v26 = vmul.f32 %v1568_v23, %v1568_v23  ;;  %v1573_v28 = vmul.f32 %v1569_v38, %v1569_v38 }
 0x220   : > { %v1574_v33 = vadd.f32 %v1572_v26, %v1552_v50  ;;  %v1575_v34 = vadd.f32 %v1573_v28, %v1553_v24  ;;  %v1592_v35 = vadd.f32 %v1590_v20, %v1570_v1  ;;  %v1593_v36 = vadd.f32 %v1591_v21, %v1571_v25  ;;  %v1645_v21 = vpop.permute.xlu1 %1644  ;;  %v3374_v26 = vld [vmem:[#allocation2 + $0x5] ss:$8 sm:$0x3] }
 0x222   : > { %v1596_v43 = vadd.f32 %v1594_v31, %v1574_v33  ;;  %v1597_v48 = vadd.f32 %v1595_v32, %v1575_v34  ;;  %v1623_v49 = vpop.permute.xlu0 %1622  ;;  %v1614_v0 = vadd.f32 %v1612_v22, %v1592_v35  ;;  %v1615_v5 = vadd.f32 %v1613_v30, %v1593_v36 }
 0x223   : > { %v1625_v53 = vsel %vm1624_vm15, %v3281_v42, %v1623_v49  ;;  %v1626_v54 = vsel %vm1624_vm15, %v1623_v49, %v3281_v42  ;;  %v1784_v42 = vpop.permute.xlu2 %1783  ;;  %v1652_v31 = vperm.slane %v3374_v26, 0  ;;  %v1653_v32 = vperm.slane %v3374_v26, 1 }
 0x224   : > { %v1634_v6 = vmul.f32 %v1630_v39, %v1625_v53  ;;  %v1635_v7 = vmul.f32 %v1631_v41, %v1626_v54  ;;  %v1619_v8 = vadd.f32 %v1617_v62, %v1597_v48  ;;  %v1618_v9 = vadd.f32 %v1616_v61, %v1596_v43 }
 0x225   : > { %v1647_v35 = vsel %vm1646_vm0, %v3295_v51, %v1645_v21  ;;  %v1648_v36 = vsel %vm1646_vm0, %v1645_v21, %v3295_v51 }
 0x226   : > { %v1636_v12 = vadd.f32 %v1634_v6, %v1614_v0  ;;  %v1637_v14 = vadd.f32 %v1635_v7, %v1615_v5  ;;  %v1638_v15 = vmul.f32 %v1634_v6, %v1634_v6  ;;  %v1639_v16 = vmul.f32 %v1635_v7, %v1635_v7 }
 0x227   : > { %v1656_v54 = vmul.f32 %v1652_v31, %v1647_v35  ;;  %v1657_v61 = vmul.f32 %v1653_v32, %v1648_v36  ;;  %v1753_v0 = vmul.f32 %v3229_v13, %v3229_v13  ;;  %v1754_v5 = vmul.f32 %v3250_v60, %v3250_v60 }
 0x228   : > { %v3368_v17 = vadd.f32 %v1638_v15, %v1618_v9  ;;  %v3370_v18 = vadd.f32 %v1639_v16, %v1619_v8 }
 0x229   : > { %v1661_v9 = vmul.f32 %v1657_v61, %v1657_v61  ;;  %v1659_v21 = vadd.f32 %v1657_v61, %v1637_v14 }
 0x22b   : > { %v3372_v19 = vpop.permute.xlu2 %1825  ;;  %v1756_v23 = vpop.permute.xlu1 %1755 }
 0x22c   : > { %v1798_v50 = vpop.permute.xlu0 %1797 }
 0x233   : > { %v1770_v24 = vpop.permute.xlu1 %1769 }
 0x23b   : > { %v1812_v22 = vpop.permute.xlu1 %1811 }
 0x23f   : > { %v1758_v20 = vpop.permute.xlu2 %1757 }
 0x240   : > { %v1759_v33 = vsel %vm1537_vm11, %v1756_v23, %v1758_v20  ;;  %v1760_v34 = vsel %vm1537_vm11, %v1758_v20, %v1756_v23  ;;  %v1658_v20 = vadd.f32 %v1656_v54, %v1636_v12  ;;  %v3420_v23 = vld [vmem:[#allocation2 + $0x6] ss:$8 sm:$0x3] }
 0x241   : > { %v1761_v48 = vmul.f32 %v1760_v34, %v1542_v47  ;;  %v1762_v49 = vmul.f32 %v1759_v33, %v1543_v44  ;;  %v1674_v34 = vperm.slane %v3420_v23, 0 }
 0x243   : > { %v1765_v6 = vmul.f32 %v1761_v48, %v1761_v48  ;;  %v1766_v7 = vmul.f32 %v1762_v49, %v1762_v49  ;;  %v1763_v58 = vadd.f32 %v1761_v48, %v3229_v13  ;;  %v1764_v27 = vadd.f32 %v1762_v49, %v3250_v60 }
 0x245   : > { %v1768_v13 = vadd.f32 %v1766_v7, %v1754_v5 }
 0x247   : > { %v1772_v38 = vpop.permute.xlu2 %1771 }
 0x248   : > { %v1774_v43 = vsel %vm1558_vm14, %v1772_v38, %v1770_v24  ;;  %v1773_v53 = vsel %vm1558_vm14, %v1770_v24, %v1772_v38 }
 0x249   : > { %v1775_v51 = vmul.f32 %v1774_v43, %v1564_v3  ;;  %v1776_v44 = vmul.f32 %v1773_v53, %v1565_v4  ;;  %v1660_v3 = vmul.f32 %v1656_v54, %v1656_v54  ;;  %v1663_v54 = vadd.f32 %v1661_v9, %v3370_v18 }
 0x24b   : > { %v1779_v4 = vmul.f32 %v1775_v51, %v1775_v51  ;;  %v1780_v38 = vmul.f32 %v1776_v44, %v1776_v44  ;;  %v1777_v48 = vadd.f32 %v1775_v51, %v1763_v58  ;;  %v1778_v49 = vadd.f32 %v1776_v44, %v1764_v27 }
 0x24c   : > { %v1662_v29 = vadd.f32 %v1660_v3, %v3368_v17 }
 0x24f   : > { %v1814_v1 = vpop.permute.xlu2 %1813 }
 0x250   : > { %v1815_v24 = vsel %vm1624_vm15, %v1812_v22, %v1814_v1  ;;  %v1816_v12 = vsel %vm1624_vm15, %v1814_v1, %v1812_v22  ;;  %v1782_v1 = vadd.f32 %v1780_v38, %v1768_v13 }
 0x251   : > { %v1817_v35 = vmul.f32 %v1815_v24, %v1630_v39  ;;  %v1818_v22 = vmul.f32 %v1816_v12, %v1631_v41 }
 0x253   : > { %v1821_v51 = vmul.f32 %v1817_v35, %v1817_v35  ;;  %v1822_v5 = vmul.f32 %v1818_v22, %v1818_v22 }
 0x257   : > { %v1665_v30 = vpop.permute.xlu2 %1664  ;;  %v1800_v8 = vpop.permute.xlu1 %1799 }
 0x258   : > { %v1786_v25 = vpop.permute.xlu0 %1785 }
 0x259   : > { %v1787_v62 = vsel %vm1580_vm12, %v1784_v42, %v1786_v25  ;;  %v1788_v47 = vsel %vm1580_vm12, %v1786_v25, %v1784_v42  ;;  %v1801_v25 = vsel %vm1602_vm13, %v1798_v50, %v1800_v8  ;;  %vm2287_vm12 = vcmask 0  }
 0x25a   : > { %v1789_v15 = vmul.f32 %v1788_v47, %v1586_v63  ;;  %v1790_v16 = vmul.f32 %v1787_v62, %v1587_v2  ;;  %v1802_v63 = vsel %vm1602_vm13, %v1800_v8, %v1798_v50  ;;  %v1767_v2 = vadd.f32 %v1765_v6, %v1753_v0  ;;  %v3447_v47 = vld [vmem:[#allocation2 + $0x7] ss:$8 sm:$0x3] }
 0x25b   : > { %v1803_v36 = vmul.f32 %v1802_v63, %v1608_v10  ;;  %v1804_v60 = vmul.f32 %v1801_v25, %v1609_v11  ;;  %v1675_v50 = vperm.slane %v3420_v23, 1  ;;  %v1696_v7 = vperm.slane %v3447_v47, 0 }
 0x25c   : > { %v1793_v14 = vmul.f32 %v1789_v15, %v1789_v15  ;;  %v1794_v33 = vmul.f32 %v1790_v16, %v1790_v16  ;;  %v1781_v53 = vadd.f32 %v1779_v4, %v1767_v2  ;;  %v1791_v59 = vadd.f32 %v1789_v15, %v1777_v48 }
 0x25d   : > { %v1792_v11 = vadd.f32 %v1790_v16, %v1778_v49  ;;  %v1807_v44 = vmul.f32 %v1803_v36, %v1803_v36  ;;  %v1808_v0 = vmul.f32 %v1804_v60, %v1804_v60  ;;  %v1697_v17 = vperm.slane %v3447_v47, 1 }
 0x25e   : > { %v1795_v61 = vadd.f32 %v1793_v14, %v1781_v53  ;;  %v1796_v62 = vadd.f32 %v1794_v33, %v1782_v1  ;;  %v1805_v8 = vadd.f32 %v1803_v36, %v1791_v59 }
 0x25f   : > { %v1840_v42 = vpop.permute.xlu2 %1839  ;;  %v1806_v3 = vadd.f32 %v1804_v60, %v1792_v11 }
 0x260   : > { %v3376_v28 = vpop.permute.xlu0 %1827  ;;  %v1809_v9 = vadd.f32 %v1807_v44, %v1795_v61  ;;  %v1810_v15 = vadd.f32 %v1808_v0, %v1796_v62 }
 0x261   : > { %v1829_v41 = vsel %vm1646_vm0, %v3372_v19, %v3376_v28  ;;  %v1830_v18 = vsel %vm1646_vm0, %v3376_v28, %v3372_v19  ;;  %v1820_v2 = vadd.f32 %v1818_v22, %v1806_v3 }
 0x262   : > { %v1831_v16 = vmul.f32 %v1829_v41, %v1652_v31  ;;  %v1832_v19 = vmul.f32 %v1830_v18, %v1653_v32  ;;  %v1819_v32 = vadd.f32 %v1817_v35, %v1805_v8 }
 0x264   : > { %v1833_v60 = vadd.f32 %v1831_v16, %v1819_v32 }
 0x267   : > { %v1687_v6 = vpop.permute.xlu2 %1686 }
 0x268   : > { %v1667_v40 = vpop.permute.xlu0 %1666 }
 0x269   : > { %v1669_v39 = vsel %vm1668_vm3, %v1665_v30, %v1667_v40  ;;  %v1670_v10 = vsel %vm1668_vm3, %v1667_v40, %v1665_v30 }
 0x26a   : > { %v1678_v30 = vmul.f32 %v1674_v34, %v1669_v39  ;;  %v1679_v40 = vmul.f32 %v1675_v50, %v1670_v10  ;;  %v1835_v39 = vmul.f32 %v1831_v16, %v1831_v16  ;;  %v1836_v10 = vmul.f32 %v1832_v19, %v1832_v19 }
 0x26c   : > { %v1680_v23 = vadd.f32 %v1678_v30, %v1658_v20  ;;  %v1681_v38 = vadd.f32 %v1679_v40, %v1659_v21  ;;  %v1682_v63 = vmul.f32 %v1678_v30, %v1678_v30  ;;  %v1683_v31 = vmul.f32 %v1679_v40, %v1679_v40 }
 0x26d   : > { %v1823_v20 = vadd.f32 %v1821_v51, %v1809_v9  ;;  %v1824_v21 = vadd.f32 %v1822_v5, %v1810_v15 }
 0x26e   : > { %v1684_v48 = vadd.f32 %v1682_v63, %v1662_v29  ;;  %v1685_v49 = vadd.f32 %v1683_v31, %v1663_v54 }
 0x26f   : > { %v1854_v35 = vpop.permute.xlu2 %1853  ;;  %v1837_v30 = vadd.f32 %v1835_v39, %v1823_v20  ;;  %v1838_v40 = vadd.f32 %v1836_v10, %v1824_v21 }
 0x270   : > { %v1842_v43 = vpop.permute.xlu0 %1841 }
 0x271   : > { %v1843_v28 = vsel %vm1668_vm3, %v1840_v42, %v1842_v43  ;;  %v1844_v58 = vsel %vm1668_vm3, %v1842_v43, %v1840_v42  ;;  %v1834_v43 = vadd.f32 %v1832_v19, %v1820_v2 }
 0x272   : > { %v1845_v13 = vmul.f32 %v1843_v28, %v1674_v34  ;;  %v1846_v12 = vmul.f32 %v1844_v58, %v1675_v50 }
 0x274   : > { %v1847_v59 = vadd.f32 %v1845_v13, %v1833_v60  ;;  %v1848_v11 = vadd.f32 %v1846_v12, %v1834_v43  ;;  %v1849_v47 = vmul.f32 %v1845_v13, %v1845_v13  ;;  %v1850_v44 = vmul.f32 %v1846_v12, %v1846_v12 }
 0x276   : > { %v1851_v16 = vadd.f32 %v1849_v47, %v1837_v30  ;;  %v1852_v19 = vadd.f32 %v1850_v44, %v1838_v40 }
 0x278   : > { %v1689_v4 = vpop.permute.xlu0 %1688 }
 0x279   : > { %v1691_v24 = vsel %vm1690_vm4, %v1687_v6, %v1689_v4  ;;  %v1692_v25 = vsel %vm1690_vm4, %v1689_v4, %v1687_v6 }
 0x27a   : > { %v1700_v27 = vmul.f32 %v1696_v7, %v1691_v24  ;;  %v1701_v26 = vmul.f32 %v1697_v17, %v1692_v25 }
 0x27c   : > { %v1702_v14 = vadd.f32 %v1700_v27, %v1680_v23  ;;  %v1703_v33 = vadd.f32 %v1701_v26, %v1681_v38  ;;  %v1704_v42 = vmul.f32 %v1700_v27, %v1700_v27  ;;  %v1705_v36 = vmul.f32 %v1701_v26, %v1701_v26 }
 0x27e   : > { %v1708_v53 = vmul.f32 %v1702_v14, %v1702_v14  ;;  %v1709_v1 = vmul.f32 %v1703_v33, %v1703_v33  ;;  %v1706_v22 = vadd.f32 %v1704_v42, %v1684_v48  ;;  %v1707_v34 = vadd.f32 %v1705_v36, %v1685_v49 }
 0x280   : > { %v1710_v50 = vmul.f32 0.11111111, %v1708_v53  ;;  %v1711_v61 = vmul.f32 0.11111111, %v1709_v1  ;;  %v1856_v62 = vpop.permute.xlu0 %1855 }
 0x281   : > { %v1857_v51 = vsel %vm1690_vm4, %v1854_v35, %v1856_v62  ;;  %v1858_v54 = vsel %vm1690_vm4, %v1856_v62, %v1854_v35 }
 0x282   : > { %v1859_v0 = vmul.f32 %v1857_v51, %v1696_v7  ;;  %v1860_v29 = vmul.f32 %v1858_v54, %v1697_v17  ;;  %v1712_v41 = vsub.f32 %v1706_v22, %v1710_v50  ;;  %v1713_v18 = vsub.f32 %v1707_v34, %v1711_v61 }
 0x284   : > { %v1861_v5 = vadd.f32 %v1859_v0, %v1847_v59  ;;  %v1862_v6 = vadd.f32 %v1860_v29, %v1848_v11  ;;  %v1863_v8 = vmul.f32 %v1859_v0, %v1859_v0  ;;  %v1864_v3 = vmul.f32 %v1860_v29, %v1860_v29 }
 0x285   : > { %v1714_v9 = vmul.f32 0.125, %v1712_v41  ;;  %v1715_v15 = vmul.f32 0.125, %v1713_v18  ;;  %v1912_v0 = vand.u32 2147483647, %v1911_v52 }
 0x286   : > { %v1867_v28 = vmul.f32 %v1861_v5, %v1861_v5  ;;  %v1868_v58 = vmul.f32 %v1862_v6, %v1862_v6  ;;  %v1865_v23 = vadd.f32 %v1863_v8, %v1851_v16  ;;  %v1866_v7 = vadd.f32 %v1864_v3, %v1852_v19 }
 0x287   : > { %v1716_v4 = vmul.f32 2.0, %v1714_v9  ;;  %v1717_v37 = vmul.f32 2.0, %v1715_v15  ;;  %v1913_v29 = vsel %vm1459_vm2, %v1912_v0, 0.0 }
 0x288   : > { %v1869_v17 = vmul.f32 0.11111111, %v1867_v28  ;;  %v1870_v38 = vmul.f32 0.11111111, %v1868_v58 }
 0x289   : > { %v1719_v24 = vsel %vm1718_vm5, %v1716_v4, -inf  ;;  %v1720_v25 = vsel %vm1718_vm5, %v1717_v37, -inf }
 0x28a   : > { %v1721_v63 = vmax.f32 %v1719_v24, %v1720_v25  ;;  %v1871_v31 = vsub.f32 %v1865_v23, %v1869_v17  ;;  %v1872_v27 = vsub.f32 %v1866_v7, %v1870_v38 }
 0x28c   : > { %1722 = vmax.xlane.f32.xlu2 %v1721_v63  ;;  %v1873_v26 = vmul.f32 0.125, %v1871_v31  ;;  %v1874_v32 = vmul.f32 0.125, %v1872_v27 }
 0x28e   : > { %v1875_v2 = vmul.f32 2.0, %v1873_v26  ;;  %v1876_v13 = vmul.f32 2.0, %v1874_v32 }
 0x290   : > { %v1877_v12 = vsel %vm1718_vm5, %v1875_v2, -inf  ;;  %v1878_v14 = vsel %vm1718_vm5, %v1876_v13, -inf }
 0x291   : > { %v1879_v33 = vmax.f32 %v1877_v12, %v1878_v14 }
 0x293   : > { %1880 = vmax.xlane.f32.xlu0 %v1879_v33 }
 0x2be   : > { %v1955_v42 = vpop.trf.xlu1 }
 0x2bf   : > { %v1972_v36 = vsel %vm616_vm1, %v1955_v42, 0 }
 0x2c0   : > { %v1991_v20 = vand.u32 4294901760, %v1972_v36 }
 0x2c2   : > { %v1992_v21 = vsub.f32 %v1972_v36, %v1991_v20  ;;  %2022 = vmatmul.f32.vlgmr.msra.gmra.mxu2 %v1991_v20 }
 0x2c3   : > { %2212 = vmatpush.msra.mxu2 %v3147_v55 }
 0x2c4   : > { %2046 = vmatmul.f32.vlgmr.msrb.gmra.mxu3 %v1992_v21  ;;  %v1993_v60 = vand.u32 4294901760, %v1992_v21 }
 0x2c5   : > { %2238 = vmatpush.msrb.mxu3 %v2163_v57 }
 0x2c6   : > { %2070 = vmatmul.f32.vlgmr.msrb.gmra.mxu0 %v1993_v60  ;;  %v1994_v43 = vsub.f32 %v1992_v21, %v1993_v60 }
 0x2c7   : > { %2260 = vmatpush.msrb.mxu0 %v3147_v55 }
 0x2c8   : > { %v1995_v48 = vand.u32 4294901760, %v1994_v43 }
 0x2ca   : > { %1996 = vmatmul.f32.vlgmr.msra.gmra.mxu1 %v1995_v48  ;;  %2116 = vmatmul.f32.vlgmr.msrb.gmra.mxu2 %v1991_v20 }
 0x2cb   : > { %2189 = vmatpush.msra.mxu1 %v3157_v56 }
 0x2cc   : > { %2142 = vmatmul.f32.vlgmr.msra.gmra.mxu3 %v1995_v48 }
 0x2ce   : > { %2168 = vmatmul.f32.vlgmr.msra.gmra.mxu0 %v1991_v20 }
 0x2d2   : > { %2094 = vmatmul.f32.vlgmr.msrb.gmra.mxu1 %v1991_v20  ;;  %2216 = vmatmul.f32.vlgmr.msra.gmra.mxu2 %v1993_v60 }
 0x2d4   : > { %2240 = vmatmul.f32.vlgmr.msrb.gmra.mxu3 %v1991_v20 }
 0x2d6   : > { %2262 = vmatmul.f32.vlgmr.msrb.gmra.mxu0 %v1991_v20 }
 0x2da   : > { %2192 = vmatmul.f32.vlgmr.msra.gmra.mxu1 %v1992_v21 }
 0x2ff   : > { %v1723_v49 = vpop.xlane.xlu2 %1722 }
 0x300   : > { %v1724_v53 = vsub.f32 %v1716_v4, %v1723_v49  ;;  %v1725_v1 = vsub.f32 %v1717_v37, %v1723_v49 }
 0x302   : > { %v1726_v57 = vmul.f32 1.442695, %v1724_v53  ;;  %v1728_v39 = vmul.f32 1.442695, %v1725_v1 }
 0x304   : > { %2505 = vpow2.f32 %v1726_v57 }
 0x305   : > { %2507 = vpow2.f32 %v1728_v39 }
 0x306   : > { %v1881_v55 = vpop.xlane.xlu0 %1880 }
 0x307   : > { %v1882_v10 = vsub.f32 %v1875_v2, %v1881_v55  ;;  %v1883_v59 = vsub.f32 %v1876_v13, %v1881_v55 }
 0x309   : > { %v1884_v11 = vmul.f32 1.442695, %v1882_v10  ;;  %v1886_v35 = vmul.f32 1.442695, %v1883_v59 }
 0x30a   : > { %v3487_v56 = vpop.eup %2505 }
 0x30b   : > { %v3489_v22 = vpop.eup %2507  ;;  %2509 = vpow2.f32 %v1884_v11  ;;  %v1730_v34 = vsel %vm1718_vm5, %v3487_v56, 0.0 }
 0x30c   : > { %2511 = vpow2.f32 %v1886_v35  ;;  %v1731_v50 = vsel %vm1718_vm5, %v3489_v22, 0.0 }
 0x30d   : > { %v1732_v61 = vadd.f32 %v1731_v50, %v1730_v34 }
 0x30f   : > { %1733 = vadd.xlane.f32.xlu1 %v1732_v61 }
 0x311   : > { %v3495_v62 = vpop.eup %2509 }
 0x312   : > { %v3497_v47 = vpop.eup %2511  ;;  %v1888_v44 = vsel %vm1718_vm5, %v3495_v62, 0.0 }
 0x313   : > { %v1889_v51 = vsel %vm1718_vm5, %v3497_v47, 0.0 }
 0x314   : > { %v1890_v54 = vadd.f32 %v1889_v51, %v1888_v44 }
 0x316   : > { %1891 = vadd.xlane.f32.xlu2 %v1890_v54 }
 0x31e   : > { %1914 = vadd.xlane.f32.xlu2 %v1913_v29 }
 0x343   : > { %v2071_v30 = vpop.f32.mrf.mxu0 }
 0x345   : > { %v2023_v18 = vpop.f32.mrf.mxu2 }
 0x347   : > { %v1997_v41 = vpop.f32.mrf.mxu1  ;;  %v2047_v40 = vpop.f32.mrf.mxu3 }
 0x348   : > { %v2024_v19 = vadd.f32 %v2023_v18, %v1997_v41 }
 0x34a   : > { %v2048_v4 = vadd.f32 %v2047_v40, %v2024_v19 }
 0x34b   : > { %v2169_v9 = vpop.f32.mrf.mxu0 }
 0x34c   : > { %v2072_v27 = vadd.f32 %v2071_v30, %v2048_v4 }
 0x34d   : > { %v2117_v8 = vpop.f32.mrf.mxu2 }
 0x34f   : > { %v2095_v6 = vpop.f32.mrf.mxu1  ;;  %v2143_v28 = vpop.f32.mrf.mxu3 }
 0x350   : > { %v2170_v45 = vadd.f32 %v2169_v9, %v2143_v28  ;;  %v2096_v43 = vadd.f32 %v2095_v6, %v2072_v27 }
 0x352   : > { %v2118_v11 = vadd.f32 %v2117_v8, %v2096_v43 }
 0x353   : > { %v2263_v1 = vpop.f32.mrf.mxu0 }
 0x355   : > { %v2217_v38 = vpop.f32.mrf.mxu2 }
 0x357   : > { %v2193_v52 = vpop.f32.mrf.mxu1  ;;  %v2241_v33 = vpop.f32.mrf.mxu3 }
 0x358   : > { %v2194_v23 = vadd.f32 %v2193_v52, %v2170_v45 }
 0x35a   : > { %v2218_v2 = vadd.f32 %v2217_v38, %v2194_v23 }
 0x35c   : > { %v2242_v48 = vadd.f32 %v2241_v33, %v2218_v2 }
 0x35e   : > { %v2264_v35 = vadd.f32 %v2263_v1, %v2242_v48 }
 0x382   : > { %v1734_v5 = vpop.xlane.xlu1 %1733 }
 0x383   : > { %2513 = vrcp.f32 %v1734_v5  ;;  %v1746_v17 = vand.u32 2147483648, %v1734_v5  ;;  %vm1740_vm2 = vweird.f32 %v1734_v5  ;;  %v1744_v24 = vand.u32 2147483647, %v1734_v5 }
 0x385   : > { %v1747_v13 = vor.u32 1.1754944e-38, %v1746_v17  ;;  %vm1745_vm7 = vcmp.eq.f32.partialorder %v1744_v24, 8.507059e+37 }
 0x389   : > { %v2514_v3 = vpop.eup %2513  ;;  %v1892_v15 = vpop.xlane.xlu2 %1891 }
 0x38a   : > { %v1736_v16 = vmul.f32 %v2514_v3, %v1734_v5  ;;  %2515 = vrcp.f32 %v1892_v15  ;;  %vm1741_vm1 = vweird.f32 %v2514_v3  ;;  %v1904_v12 = vand.u32 2147483648, %v1892_v15 }
 0x38b   : > { %vm1742_vm6 = vmor %vm1740_vm2, %vm1741_vm1  ;;  %v1902_v36 = vand.u32 2147483647, %v1892_v15  ;;  %vm1898_vm9 = vweird.f32 %v1892_v15 }
 0x38c   : > { %v1737_v46 = vsub.f32 1.0, %v1736_v16  ;;  %v1905_v49 = vor.u32 1.1754944e-38, %v1904_v12 }
 0x38d   : > { %vm1903_vm11 = vcmp.eq.f32.partialorder %v1902_v36, 8.507059e+37 }
 0x38e   : > { %v1738_v58 = vmul.f32 %v2514_v3, %v1737_v46 }
 0x390   : > { %v2516_v37 = vpop.eup %2515  ;;  %v1739_v7 = vadd.f32 %v2514_v3, %v1738_v58 }
 0x391   : > { %v1894_v25 = vmul.f32 %v2516_v37, %v1892_v15  ;;  %v1915_v63 = vpop.xlane.xlu2 %1914  ;;  %vm1899_vm8 = vweird.f32 %v2516_v37 }
 0x392   : > { %v1916_v31 = vrot.slane %v1915_v63, 4  ;;  %v1743_v26 = vsel %vm1742_vm6, %v2514_v3, %v1739_v7  ;;  %vm1900_vm10 = vmor %vm1898_vm9, %vm1899_vm8 }
 0x393   : > { %v1895_v32 = vsub.f32 1.0, %v1894_v25  ;;  %v1748_v20 = vsel %vm1745_vm7, %v1747_v13, %v1743_v26 }
 0x394   : > { %v1917_v14 = vadd.f32 %v1916_v31, %v1915_v63  ;;  %v1750_v57 = vmul.f32 256.0, %v1748_v20 }
 0x395   : > { %v1896_v42 = vmul.f32 %v2516_v37, %v1895_v32 }
 0x396   : > { %v1918_v21 = vrot.slane %v1917_v14, 2  ;;  %v1751_v44 = vmul.f32 %v3487_v56, %v1750_v57  ;;  %v1752_v51 = vmul.f32 %v3489_v22, %v1750_v57 }
 0x397   : > { %v1897_v60 = vadd.f32 %v2516_v37, %v1896_v42 }
 0x398   : > { %v1919_v53 = vadd.f32 %v1918_v21, %v1917_v14 }
 0x399   : > { %v1901_v39 = vsel %vm1900_vm10, %v2516_v37, %v1897_v60 }
 0x39a   : > { %v1920_v55 = vrot.slane %v1919_v53, 1  ;;  %v1906_v10 = vsel %vm1903_vm11, %v1905_v49, %v1901_v39 }
 0x39b   : > { %v1908_v59 = vmul.f32 256.0, %v1906_v10 }
 0x39c   : > { %v1921_v34 = vadd.f32 %v1920_v55, %v1919_v53 }
 0x39d   : > { %v1909_v50 = vmul.f32 %v3495_v62, %v1908_v59  ;;  %v1910_v61 = vmul.f32 %v3497_v47, %v1908_v59 }
 0x39e   : > { %2422 = vpush %v1921_v34 }
 0x39f   : > { %v2266_v54 = vmul.f32 %v2118_v11, %v1909_v50  ;;  %v2267_v0 = vmul.f32 %v2264_v35, %v1910_v61  ;;  %v1923_v29 = vsub.f32 %v1909_v50, %v1751_v44  ;;  %v1924_v41 = vsub.f32 %v1910_v61, %v1752_v51 }
 0x3a1   : > { %v2268_v18 = vsel %vm1718_vm5, %v2266_v54, 0.0  ;;  %v2269_v30 = vsel %vm1718_vm5, %v2267_v0, 0.0  ;;  %v1925_v40 = vand.u32 2147483647, %v1923_v29  ;;  %v1926_v5 = vand.u32 2147483647, %v1924_v41 }
 0x3a2   : > { %v2270_v6 = vadd.f32 %v2269_v30, %v2268_v18 }
 0x3a3   : > { %v1927_v62 = vsel %vm1718_vm5, %v1925_v40, 0.0  ;;  %v1928_v47 = vsel %vm1718_vm5, %v1926_v5, 0.0 }
 0x3a4   : > { %2271 = vadd.xlane.f32.xlu2 %v2270_v6  ;;  %v1929_v56 = vadd.f32 %v1928_v47, %v1927_v62 }
 0x3a6   : > { %1930 = vadd.xlane.f32.xlu0 %v1929_v56 }
 0x3cf   : > { %s2423_s14 = spop %2422 }
 0x3d0   : > { %s2283_s15 = smul.f32 0.001, %s2423_s14 }
 0x417   : > { %v2272_v22 = vpop.xlane.xlu2 %2271 }
 0x418   : > { %v2273_v8 = vrot.slane %v2272_v22, 4 }
 0x419   : > { %v1931_v3 = vpop.xlane.xlu0 %1930 }
 0x41a   : > { %v2274_v9 = vadd.f32 %v2273_v8, %v2272_v22  ;;  %v1932_v15 = vrot.slane %v1931_v3, 4 }
 0x41c   : > { %v2275_v16 = vrot.slane %v2274_v9, 2  ;;  %v1933_v19 = vadd.f32 %v1932_v15, %v1931_v3 }
 0x41e   : > { %v2276_v28 = vadd.f32 %v2275_v16, %v2274_v9  ;;  %v1934_v45 = vrot.slane %v1933_v19, 2 }
 0x420   : > { %v1935_v46 = vadd.f32 %v1934_v45, %v1933_v19  ;;  %v2277_v52 = vrot.slane %v2276_v28, 1 }
 0x422   : > { %v1936_v58 = vrot.slane %v1935_v46, 1  ;;  %v2278_v37 = vadd.f32 %v2277_v52, %v2276_v28 }
 0x424   : > { %v1937_v4 = vadd.f32 %v1936_v58, %v1935_v46 }
 0x426   : > { %2424 = vpush %v1937_v4 }
 0x427   : > { %2426 = vpush %v2278_v37 }
 0x457   : > { %s2425_s9 = spop %2424 }
 0x458   : > { %s2281_s18 = smul.f32 0.005, %s2425_s9  ;;  %s2427_s13 = spop %2426 }
 0x459   : > { %s2280_s11 = smul.f32 0.00012207031, %s2427_s13 }
 0x45b   : > { %s2282_s12 = sadd.f32 %s2281_s18, %s2280_s11 }
 0x45d   : > { %s2284_s17 = sadd.f32 %s2283_s15, %s2282_s12 }
 0x45f   : > { %v2285_v23 = vstv %s2284_s17 }
 0x460   : > { %2288 = vst.msk [vmem:[%s294_s16] sm:$0x1] %vm2287_vm12, %v2285_v23 }
 0x461 PF: > { %p16_p7 = scmp.ge.s32.totalorder %s2712_s22, 4   ;;  %s3542_s18 = smov %s2637_s19 }
 0x462   : > { %s3543_s19 = smov %s2641_s20  ;;  %s3544_s20 = smov %s2722_s25 }
 0x463   : > { %s3545_s21 = smov %s2712_s22  ;;  %18 = sbr.rel (!%p16_p7) target bundleno = 4 (0x4), region = 103 }
 0x468   :  { %2306 = vsyncpa [#allocation3], 1 }
 0x469   :  { %2308 = vsyncpa [#allocation3 + $0x1], 1 }
 0x46a   :  { %2309 = vsyncpa [#allocation5], 1 }
 0x46b   :  { %2311 = vsyncpa [#allocation5 + $0x1], 1 }

</bundles_post_ra>
